<compile_context>
chip_gen: v7x
topology: tpu7x:2x2x1
jax: 0.10.0
libtpu: 0.0.40
codegen_flags: <defaults>
</compile_context>

<pallas_src>
import functools

import jax
import jax.numpy as jnp
from jax.experimental import pallas as pl
from jax.experimental.pallas import tpu as pltpu

LN_EPS = 1e-5   # nn.LayerNorm default eps
_LANE = 128


def _round_up(x, m):
    return ((x + m - 1) // m) * m


def _layernorm_masked(x, gamma, beta, n_real, n_pad):
    """LayerNorm over the last axis using only the first n_real features.

    x: (TB, n_pad) f32, padded columns exactly zero (invariant kept by
    prepare_actor_params).  Uses the centered-variance form; when features are
    padded, an iota mask keeps the statistics identical to an unpadded
    LayerNorm without cancellation issues.
    """
    if n_real == n_pad:
        mean = jnp.mean(x, axis=-1, keepdims=True)
        centered = x - mean
        var = jnp.mean(centered * centered, axis=-1, keepdims=True)
    else:
        inv_n = 1.0 / n_real
        col = jax.lax.broadcasted_iota(jnp.int32, x.shape, x.ndim - 1)
        mask = col < n_real
        mean = jnp.sum(x, axis=-1, keepdims=True) * inv_n
        centered = jnp.where(mask, x - mean, 0.0)
        var = jnp.sum(centered * centered, axis=-1, keepdims=True) * inv_n
    inv = jax.lax.rsqrt(var + LN_EPS)          # EUP rsqrt (free slot)
    return (x - mean) * inv * gamma + beta


def _actor_kernel(x_ref, w1_ref, w2_ref, w3_ref, vec_ref, o_ref, *,
                  h_real, h_pad, a_pad, compute_dtype):
    x = x_ref[...]                              # (TB, S) already compute_dtype
    vec = vec_ref[...]                          # (8, P) f32 packed param slab

    b1, g1, be1 = vec[0:1, :h_pad], vec[1:2, :h_pad], vec[2:3, :h_pad]
    b2, g2, be2 = vec[3:4, :h_pad], vec[4:5, :h_pad], vec[5:6, :h_pad]
    b3 = vec[6:7, :a_pad]

    # Layer 1: Linear -> ReLU -> LayerNorm
    h1 = jnp.dot(x, w1_ref[...], preferred_element_type=jnp.float32) + b1
    h1 = jnp.maximum(h1, 0.0)
    h1 = _layernorm_masked(h1, g1, be1, h_real, h_pad)

    # Layer 2: Linear -> ReLU -> LayerNorm
    h2 = jnp.dot(h1.astype(compute_dtype), w2_ref[...],
                 preferred_element_type=jnp.float32) + b2
    h2 = jnp.maximum(h2, 0.0)
    h2 = _layernorm_masked(h2, g2, be2, h_real, h_pad)

    # Output layer: Linear -> Tanh (lane-dense full-block store)
    out = jnp.dot(h2.astype(compute_dtype), w3_ref[...],
                  preferred_element_type=jnp.float32) + b3
    o_ref[...] = jnp.tanh(out)


def prepare_actor_params(params, compute_dtype=jnp.bfloat16):
    """Pad, pack and cast parameters ONCE (not per forward call).

    Zero-padding invariant: padded weight rows/cols, biases, gamma, beta are
    all exactly zero, so padded hidden features stay zero through ReLU and the
    masked LayerNorm and contribute nothing to the next matmul.  Do not
    re-pad params outside this function.
    """
    S, H = params["w1"].shape
    A = params["w3"].shape[1]
    H_pad = _round_up(H, _LANE)
    A_pad = _round_up(A, _LANE)
    P = max(H_pad, A_pad)

    def pad2(w, rows, cols):
        return jnp.pad(w, ((0, rows - w.shape[0]), (0, cols - w.shape[1])))

    # NOTE: w1 keeps its true row count S (no state-dim padding).
    w1 = pad2(params["w1"], S, H_pad).astype(compute_dtype)       # (S, H_pad)
    w2 = pad2(params["w2"], H_pad, H_pad).astype(compute_dtype)   # (H_pad, H_pad)
    w3 = pad2(params["w3"], H_pad, A_pad).astype(compute_dtype)   # (H_pad, A_pad)

    # Packed slab: rows 0..6 = b1, g1, be1, b2, g2, be2, b3 ; row 7 unused.
    vec = jnp.zeros((8, P), jnp.float32)
    for i, v in enumerate((params["b1"], params["g1"], params["be1"],
                           params["b2"], params["g2"], params["be2"],
                           params["b3"])):
        v = jnp.asarray(v, jnp.float32).reshape(-1)
        vec = vec.at[i, : v.shape[0]].set(v)

    return dict(w1=w1, w2=w2, w3=w3, vec=vec,
                S=S, H=H, A=A, H_pad=H_pad, A_pad=A_pad,
                compute_dtype=compute_dtype)


def _choose_tb(B, block_b, compute_dtype):
    """Batch tile heuristic (see header). Rounded to the dtype sublane tile."""
    sub = 8 * max(1, 4 // jnp.dtype(compute_dtype).itemsize)   # 8 f32 / 16 bf16
    if block_b is not None:
        tb = block_b
    elif B <= 128:
        tb = B                    # single grid step: no pipeline bubbles
    elif B <= 512:
        tb = -(-B // 2)           # two steps: feeds both v7x TensorCores
    else:
        tb = 256                  # fill the 256-wide MXU (v6e/v7x)
    tb = min(tb, B)
    return max(_round_up(tb, sub), sub)


def actor_forward(state, prep, *, block_b=None):
    """state: (B, state_size) float32. Returns (B, action_size) float32."""
    B, S = state.shape
    assert S == prep["S"], "state feature dim mismatch"
    H_pad, A_pad, A = prep["H_pad"], prep["A_pad"], prep["A"]
    P = prep["vec"].shape[1]
    cd = prep["compute_dtype"]

    TB = _choose_tb(B, block_b, cd)
    grid = pl.cdiv(B, TB)

    # Cast once on the host side; no batch or feature padding copy.
    x = state.astype(cd)

    kernel = functools.partial(
        _actor_kernel, h_real=prep["H"], h_pad=H_pad, a_pad=A_pad,
        compute_dtype=cd)

    # Explicit VMEM budget only when the resident weights get large.
    itemsize = jnp.dtype(cd).itemsize
    w_bytes = (prep["w1"].size + prep["w2"].size + prep["w3"].size) * itemsize
    tile_bytes = TB * (S * itemsize + A_pad * 4)
    vmem_est = 2 * w_bytes + 3 * tile_bytes + prep["vec"].size * 8 + (2 << 20)
    cparams = dict(dimension_semantics=("parallel",))
    if vmem_est > (16 << 20):
        cparams["vmem_limit_bytes"] = int(min(vmem_est, 96 << 20))

    out = pl.pallas_call(
        kernel,
        out_shape=jax.ShapeDtypeStruct((B, A_pad), jnp.float32),
        grid=(grid,),
        in_specs=[
            pl.BlockSpec((TB, S), lambda i: (i, 0)),         # activations (pipelined)
            pl.BlockSpec((S, H_pad), lambda i: (0, 0)),      # w1 (VMEM-resident)
            pl.BlockSpec((H_pad, H_pad), lambda i: (0, 0)),  # w2 (VMEM-resident)
            pl.BlockSpec((H_pad, A_pad), lambda i: (0, 0)),  # w3 (VMEM-resident)
            pl.BlockSpec((8, P), lambda i: (0, 0)),          # packed bias/LN slab
        ],
        out_specs=pl.BlockSpec((TB, A_pad), lambda i: (i, 0)),  # lane-dense output
        compiler_params=pltpu.CompilerParams(**cparams),
    )(x, prep["w1"], prep["w2"], prep["w3"], prep["vec"])

    return out[:, :A]


def init_actor_params(key, state_size, action_size, hidden_size):
    """Deterministic synthetic init (PyTorch-like uniform fan-in scaling)."""
    ks = jax.random.split(key, 6)

    def linear(kw, kb, fan_in, fan_out):
        bound = 1.0 / jnp.sqrt(fan_in)
        w = jax.random.uniform(kw, (fan_in, fan_out), jnp.float32, -bound, bound)
        b = jax.random.uniform(kb, (fan_out,), jnp.float32, -bound, bound)
        return w, b

    w1, b1 = linear(ks[0], ks[1], state_size, hidden_size)
    w2, b2 = linear(ks[2], ks[3], hidden_size, hidden_size)
    w3, b3 = linear(ks[4], ks[5], hidden_size, action_size)

    return {
        "w1": w1, "b1": b1,
        "g1": jnp.ones((hidden_size,), jnp.float32),
        "be1": jnp.zeros((hidden_size,), jnp.float32),
        "w2": w2, "b2": b2,
        "g2": jnp.ones((hidden_size,), jnp.float32),
        "be2": jnp.zeros((hidden_size,), jnp.float32),
        "w3": w3, "b3": b3,
    }


def actor_reference(state, p):
    """Pure-JAX f32 reference (HIGHEST precision matmuls) for correctness."""
    dot = functools.partial(jnp.dot, precision=jax.lax.Precision.HIGHEST)

    def ln(x, g, b):
        mean = jnp.mean(x, axis=-1, keepdims=True)
        var = jnp.mean((x - mean) ** 2, axis=-1, keepdims=True)
        return (x - mean) * jax.lax.rsqrt(var + LN_EPS) * g + b

    h = jnp.maximum(dot(state, p["w1"]) + p["b1"], 0.0)
    h = ln(h, p["g1"], p["be1"])
    h = jnp.maximum(dot(h, p["w2"]) + p["b2"], 0.0)
    h = ln(h, p["g2"], p["be2"])
    return jnp.tanh(dot(h, p["w3"]) + p["b3"])


if __name__ == "__main__":
    key = jax.random.PRNGKey(0)
    k1, k2, k3, k4 = jax.random.split(key, 4)

    # Config A: module-default hidden_size=256; B=256 -> TB=128, grid=2
    # (two pipelined batch tiles; shards across both v7x TensorCores).
    B, S, A, H = 256, 16, 4, 256
    state = jax.random.normal(k1, (B, S), jnp.float32)
    params = init_actor_params(k2, S, A, H)
    ref = actor_reference(state, params)

    # Default bf16 MXU fast path (f32 accumulation / LN / tanh), loose check.
    prep_bf16 = prepare_actor_params(params)
    out_bf16 = jax.block_until_ready(actor_forward(state, prep_bf16))
    assert out_bf16.shape == (B, A)
    assert jnp.allclose(out_bf16, ref, atol=1e-1, rtol=1e-1), "bf16 path mismatch"

    # Full f32 path (validation), tight check against nn-module semantics.
    prep_f32 = prepare_actor_params(params, compute_dtype=jnp.float32)
    out_f32 = jax.block_until_ready(actor_forward(state, prep_f32))
    assert jnp.allclose(out_f32, ref, atol=1e-3, rtol=1e-3), "f32 path mismatch"

    # Config B: small hidden (32) + ragged batch (61) -> exercises masked
    # LayerNorm over padded features and the ragged (masked) last block.
    B2, S2, A2, H2 = 61, 16, 4, 32
    state2 = jax.random.normal(k3, (B2, S2), jnp.float32)
    params2 = init_actor_params(k4, S2, A2, H2)
    prep2 = prepare_actor_params(params2, compute_dtype=jnp.float32)
    out2 = jax.block_until_ready(actor_forward(state2, prep2))
    assert out2.shape == (B2, A2)
    assert jnp.allclose(out2, actor_reference(state2, params2),
                        atol=1e-3, rtol=1e-3), "padded/ragged path mismatch"

    print("KERNEL_OK")
</pallas_src>

<mosaic_0001>
module attributes {stable_mosaic.version = 11 : i64} {
  func.func @_actor_kernel(%arg0: i32, %arg1: memref<128x16xbf16, #tpu.memory_space<vmem>>, %arg2: memref<16x256xbf16, #tpu.memory_space<vmem>>, %arg3: memref<256x256xbf16, #tpu.memory_space<vmem>>, %arg4: memref<256x128xbf16, #tpu.memory_space<vmem>>, %arg5: memref<8x256xf32, #tpu.memory_space<vmem>>, %arg6: memref<128x128xf32, #tpu.memory_space<vmem>>) attributes {dimension_semantics = [#tpu.dimension_semantics<parallel>], iteration_bounds = array<i64: 2>, scalar_prefetch = 0 : i64, scratch_operands = 0 : i64, tpu.core_type = #tpu.core_type<tc>, window_params = [{transform_indices = @transform_0, window_bounds = array<i64: 128, 16>}, {pipeline_mode = #tpu.pipeline_mode<synchronous>, transform_indices = @transform_1, window_bounds = array<i64: 16, 256>}, {pipeline_mode = #tpu.pipeline_mode<synchronous>, transform_indices = @transform_2, window_bounds = array<i64: 256, 256>}, {pipeline_mode = #tpu.pipeline_mode<synchronous>, transform_indices = @transform_3, window_bounds = array<i64: 256, 128>}, {pipeline_mode = #tpu.pipeline_mode<synchronous>, transform_indices = @transform_4, window_bounds = array<i64: 8, 256>}, {transform_indices = @transform_5, window_bounds = array<i64: 128, 128>}]} {
    %c0 = arith.constant 0 : index
    %c0_0 = arith.constant 0 : index
    %0 = vector.load %arg1[%c0, %c0_0] : memref<128x16xbf16, #tpu.memory_space<vmem>>, vector<128x16xbf16>
    %c0_1 = arith.constant 0 : index
    %c0_2 = arith.constant 0 : index
    %1 = vector.load %arg5[%c0_1, %c0_2] : memref<8x256xf32, #tpu.memory_space<vmem>>, vector<8x256xf32>
    %2 = vector.extract_strided_slice %1 {offsets = [0, 0], sizes = [1, 256], strides = [1, 1]} : vector<8x256xf32> to vector<1x256xf32>
    %3 = vector.extract_strided_slice %1 {offsets = [1, 0], sizes = [1, 256], strides = [1, 1]} : vector<8x256xf32> to vector<1x256xf32>
    %4 = vector.extract_strided_slice %1 {offsets = [2, 0], sizes = [1, 256], strides = [1, 1]} : vector<8x256xf32> to vector<1x256xf32>
    %5 = vector.extract_strided_slice %1 {offsets = [3, 0], sizes = [1, 256], strides = [1, 1]} : vector<8x256xf32> to vector<1x256xf32>
    %6 = vector.extract_strided_slice %1 {offsets = [4, 0], sizes = [1, 256], strides = [1, 1]} : vector<8x256xf32> to vector<1x256xf32>
    %7 = vector.extract_strided_slice %1 {offsets = [5, 0], sizes = [1, 256], strides = [1, 1]} : vector<8x256xf32> to vector<1x256xf32>
    %8 = vector.extract_strided_slice %1 {offsets = [6, 0], sizes = [1, 128], strides = [1, 1]} : vector<8x256xf32> to vector<1x128xf32>
    %c0_3 = arith.constant 0 : index
    %c0_4 = arith.constant 0 : index
    %9 = vector.load %arg2[%c0_3, %c0_4] : memref<16x256xbf16, #tpu.memory_space<vmem>>, vector<16x256xbf16>
    %cst = arith.constant dense<0.000000e+00> : vector<128x256xf32>
    %10 = tpu.matmul %0, %9, %cst {dimension_numbers = #tpu.dot_dimension_numbers<[1], [0], [0], [1], [0, 0, 1, 1], [], []>} : vector<128x16xbf16>, vector<16x256xbf16>, vector<128x256xf32> -> vector<128x256xf32>
    %11 = vector.broadcast %2 : vector<1x256xf32> to vector<128x256xf32>
    %12 = arith.addf %10, %11 : vector<128x256xf32>
    %cst_5 = arith.constant 0.000000e+00 : f32
    %13 = vector.broadcast %cst_5 : f32 to vector<128x256xf32>
    %14 = arith.maximumf %12, %13 : vector<128x256xf32>
    %cst_6 = arith.constant dense<0.000000e+00> : vector<128xf32>
    %15 = vector.multi_reduction <add>, %14, %cst_6 [1] : vector<128x256xf32> to vector<128xf32>
    %16 = vector.shape_cast %15 : vector<128xf32> to vector<128x1xf32>
    %cst_7 = arith.constant 2.560000e+02 : f32
    %17 = vector.broadcast %cst_7 : f32 to vector<128x1xf32>
    %18 = arith.divf %16, %17 : vector<128x1xf32>
    %19 = vector.broadcast %18 : vector<128x1xf32> to vector<128x256xf32>
    %20 = arith.subf %14, %19 : vector<128x256xf32>
    %21 = arith.mulf %20, %20 : vector<128x256xf32>
    %cst_8 = arith.constant dense<0.000000e+00> : vector<128xf32>
    %22 = vector.multi_reduction <add>, %21, %cst_8 [1] : vector<128x256xf32> to vector<128xf32>
    %23 = vector.shape_cast %22 : vector<128xf32> to vector<128x1xf32>
    %cst_9 = arith.constant 2.560000e+02 : f32
    %24 = vector.broadcast %cst_9 : f32 to vector<128x1xf32>
    %25 = arith.divf %23, %24 : vector<128x1xf32>
    %cst_10 = arith.constant 9.99999974E-6 : f32
    %26 = vector.broadcast %cst_10 : f32 to vector<128x1xf32>
    %27 = arith.addf %25, %26 : vector<128x1xf32>
    %28 = math.rsqrt %27 : vector<128x1xf32>
    %29 = vector.broadcast %18 : vector<128x1xf32> to vector<128x256xf32>
    %30 = arith.subf %14, %29 : vector<128x256xf32>
    %31 = vector.broadcast %28 : vector<128x1xf32> to vector<128x256xf32>
    %32 = arith.mulf %30, %31 : vector<128x256xf32>
    %33 = vector.broadcast %3 : vector<1x256xf32> to vector<128x256xf32>
    %34 = arith.mulf %32, %33 : vector<128x256xf32>
    %35 = vector.broadcast %4 : vector<1x256xf32> to vector<128x256xf32>
    %36 = arith.addf %34, %35 : vector<128x256xf32>
    %37 = arith.truncf %36 : vector<128x256xf32> to vector<128x256xbf16>
    %c0_11 = arith.constant 0 : index
    %c0_12 = arith.constant 0 : index
    %38 = vector.load %arg3[%c0_11, %c0_12] : memref<256x256xbf16, #tpu.memory_space<vmem>>, vector<256x256xbf16>
    %cst_13 = arith.constant dense<0.000000e+00> : vector<128x256xf32>
    %39 = tpu.matmul %37, %38, %cst_13 {dimension_numbers = #tpu.dot_dimension_numbers<[1], [0], [0], [1], [0, 0, 1, 1], [], []>} : vector<128x256xbf16>, vector<256x256xbf16>, vector<128x256xf32> -> vector<128x256xf32>
    %40 = vector.broadcast %5 : vector<1x256xf32> to vector<128x256xf32>
    %41 = arith.addf %39, %40 : vector<128x256xf32>
    %cst_14 = arith.constant 0.000000e+00 : f32
    %42 = vector.broadcast %cst_14 : f32 to vector<128x256xf32>
    %43 = arith.maximumf %41, %42 : vector<128x256xf32>
    %cst_15 = arith.constant dense<0.000000e+00> : vector<128xf32>
    %44 = vector.multi_reduction <add>, %43, %cst_15 [1] : vector<128x256xf32> to vector<128xf32>
    %45 = vector.shape_cast %44 : vector<128xf32> to vector<128x1xf32>
    %cst_16 = arith.constant 2.560000e+02 : f32
    %46 = vector.broadcast %cst_16 : f32 to vector<128x1xf32>
    %47 = arith.divf %45, %46 : vector<128x1xf32>
    %48 = vector.broadcast %47 : vector<128x1xf32> to vector<128x256xf32>
    %49 = arith.subf %43, %48 : vector<128x256xf32>
    %50 = arith.mulf %49, %49 : vector<128x256xf32>
    %cst_17 = arith.constant dense<0.000000e+00> : vector<128xf32>
    %51 = vector.multi_reduction <add>, %50, %cst_17 [1] : vector<128x256xf32> to vector<128xf32>
    %52 = vector.shape_cast %51 : vector<128xf32> to vector<128x1xf32>
    %cst_18 = arith.constant 2.560000e+02 : f32
    %53 = vector.broadcast %cst_18 : f32 to vector<128x1xf32>
    %54 = arith.divf %52, %53 : vector<128x1xf32>
    %cst_19 = arith.constant 9.99999974E-6 : f32
    %55 = vector.broadcast %cst_19 : f32 to vector<128x1xf32>
    %56 = arith.addf %54, %55 : vector<128x1xf32>
    %57 = math.rsqrt %56 : vector<128x1xf32>
    %58 = vector.broadcast %47 : vector<128x1xf32> to vector<128x256xf32>
    %59 = arith.subf %43, %58 : vector<128x256xf32>
    %60 = vector.broadcast %57 : vector<128x1xf32> to vector<128x256xf32>
    %61 = arith.mulf %59, %60 : vector<128x256xf32>
    %62 = vector.broadcast %6 : vector<1x256xf32> to vector<128x256xf32>
    %63 = arith.mulf %61, %62 : vector<128x256xf32>
    %64 = vector.broadcast %7 : vector<1x256xf32> to vector<128x256xf32>
    %65 = arith.addf %63, %64 : vector<128x256xf32>
    %66 = arith.truncf %65 : vector<128x256xf32> to vector<128x256xbf16>
    %c0_20 = arith.constant 0 : index
    %c0_21 = arith.constant 0 : index
    %67 = vector.load %arg4[%c0_20, %c0_21] : memref<256x128xbf16, #tpu.memory_space<vmem>>, vector<256x128xbf16>
    %cst_22 = arith.constant dense<0.000000e+00> : vector<128x128xf32>
    %68 = tpu.matmul %66, %67, %cst_22 {dimension_numbers = #tpu.dot_dimension_numbers<[1], [0], [0], [1], [0, 0, 1, 1], [], []>} : vector<128x256xbf16>, vector<256x128xbf16>, vector<128x128xf32> -> vector<128x128xf32>
    %69 = vector.broadcast %8 : vector<1x128xf32> to vector<128x128xf32>
    %70 = arith.addf %68, %69 : vector<128x128xf32>
    %71 = math.tanh %70 : vector<128x128xf32>
    %c0_23 = arith.constant 0 : index
    %c0_24 = arith.constant 0 : index
    %72 = vector.load %arg6[%c0_23, %c0_24] : memref<128x128xf32, #tpu.memory_space<vmem>>, vector<128x128xf32>
    tpu.vector_store %arg6[%c0_23, %c0_24], %71 {strides = array<i32>} : memref<128x128xf32, #tpu.memory_space<vmem>>, vector<128x128xf32>,
    return
  }
  func.func @transform_0(%arg0: i32) -> (i32, i32) {
    %c0_i32 = arith.constant 0 : i32
    %c0_i32_0 = arith.constant 0 : i32
    return %arg0, %c0_i32 : i32, i32
  }
  func.func @transform_1(%arg0: i32) -> (i32, i32) {
    %c0_i32 = arith.constant 0 : i32
    %c0_i32_0 = arith.constant 0 : i32
    %c0_i32_1 = arith.constant 0 : i32
    return %c0_i32, %c0_i32_0 : i32, i32
  }
  func.func @transform_2(%arg0: i32) -> (i32, i32) {
    %c0_i32 = arith.constant 0 : i32
    %c0_i32_0 = arith.constant 0 : i32
    %c0_i32_1 = arith.constant 0 : i32
    return %c0_i32, %c0_i32_0 : i32, i32
  }
  func.func @transform_3(%arg0: i32) -> (i32, i32) {
    %c0_i32 = arith.constant 0 : i32
    %c0_i32_0 = arith.constant 0 : i32
    %c0_i32_1 = arith.constant 0 : i32
    return %c0_i32, %c0_i32_0 : i32, i32
  }
  func.func @transform_4(%arg0: i32) -> (i32, i32) {
    %c0_i32 = arith.constant 0 : i32
    %c0_i32_0 = arith.constant 0 : i32
    %c0_i32_1 = arith.constant 0 : i32
    return %c0_i32, %c0_i32_0 : i32, i32
  }
  func.func @transform_5(%arg0: i32) -> (i32, i32) {
    %c0_i32 = arith.constant 0 : i32
    %c0_i32_0 = arith.constant 0 : i32
    return %arg0, %c0_i32 : i32, i32
  }
}

</mosaic_0001>

<bundles_post_ra>
// kernel: tpu_custom_call.1
= control target key start
LH: loop header
LB: loop body
LE: loop exit
PB: predicated region body
PF: predicated region fallthrough
CT: control target
= control target key end

     0   :  { %10 = vsyncpa [#allocation3], 0  ;;  %s3754_s0 = inlined_call_operand.vmem [shape: bf16[256,16], index: 0, kind: input, shape index: {}]   ;;  %s3755_s1 = inlined_call_operand.vmem [shape: bf16[16,256], index: 1, kind: input, shape index: {}]   ;;  %s3756_s2 = inlined_call_operand.hbm [shape: bf16[256,256], index: 2, kind: input, shape index: {}]   ;;  %s3757_s3 = inlined_call_operand.vmem [shape: bf16[256,128], index: 3, kind: input, shape index: {}]   ;;  %s3758_s4 = inlined_call_operand.hbm [shape: f32[8,256], index: 4, kind: input, shape index: {}]   ;;  %s3759_s5 = inlined_call_operand.hbm [shape: f32[256,128], index: 5, kind: output, shape index: {}]  }
   0x1   :  { %11 = vsyncpa [#allocation6], 0 }
   0x2   :  { %12 = vsyncpa [#allocation4], 0 }
   0x3   :  { %14 = vsyncpa [#allocation4 + $0x1], 0  ;;  %s2463_s18 = smov 0   ;;  %s2465_s19 = smov 0  }
   0x4   :  { %s2467_s20 = smov 0   ;;  %s2469_s21 = smov 0  }
   0x5 LB: > { %s2484_s22 = sadd.s32 4294967295, %s2423_s21   ;;  %s1912_s23 = sadd.s32 4294967294, %s2423_s21   ;;  %s2423_s21 = sphi %s2469_s21, %s3831_s21   ;;  %s2419_s20 = sphi %s2467_s20, %s3830_s20   ;;  %s2415_s19 = sphi %s2465_s19, %s3829_s19   ;;  %s2411_s18 = sphi %s2463_s18, %s3828_s18  }
   0x6   : > { %s2488_s24 = sadd.s32 1, %s2423_s21   ;;  %s137_s25 = sadd.s32 1, %s2419_s20 }
   0x7   : > { %s134_s26 = ssub.s32 %s2423_s21, %s2488_s24  ;;  %p147_p0 = scmp.ne.s32.totalorder %s2419_s20, %s2415_s19 }
   0x8   : > { %p135_p1 = scmp.eq.s32.totalorder %s134_s26, 0  ;;  %p148_p2 = scmp.eq.s32.totalorder %s2484_s22, 1 }
   0x9   : > { %p153_p3 = scmp.ne.s32.totalorder %s2415_s19, %s2411_s18  ;;  %p154_p4 = scmp.eq.s32.totalorder %s1912_s23, 1 }
   0xa   : > { %s2499_s27 = scalar_select %p135_p1, %s2419_s20, %s137_s25  }
   0xb   : > { %p2501_p5 = por %p148_p2, %p147_p0  ;;  %p2505_p6 = por %p154_p4, %p153_p3 }
   0xc   : > { %p1913_p7 = scmp.ge.s32.totalorder %s2423_s21, 1  ;;  %p161_p8 = scmp.lt.s32.totalorder %s2423_s21, 3 }
   0xd   : > { %s3790_s28 = scalar_select %p2501_p5, 1, 0 }
   0xe   : > { %s3791_s29 = scalar_select %p2505_p6, 1, 0 }
   0xf   : > { %p3760_p9 = scmp.eq.s32.totalorder %s2484_s22, 0  ;;  %p2512_p10 = pnand %p1913_p7, %p161_p8 }
  0x10   : > { %s2425_s6 = smov [#allocation2]   ;;  %s2426_s9 = smov [#allocation5]  }
  0x11   : > { %s3792_s30 = scalar_select %p2512_p10, 1, 0 }
  0x12   : > { %s176_s7 = sshll.u32 %s2425_s6, 4  ;;  %p2069_p11 = pneg %p2512_p10  ;;  %s177_s7 = int_to_ptr.vmem [resolvable:$true] %s176_s7 }
  0x13   : > { %s193_s10 = sshll.u32 %s2426_s9, 4  ;;  %s2297_s13 = scalar_lea.hbm %s3756_s2, 4096  ;;  %s2524_s10 = int_to_ptr.vmem [resolvable:$true] %s193_s10 }
  0x14   : > { %p2520_p12 = pnand %p3760_p9, %p2069_p11  ;;  %p2298_p13 = scmp.ne.s32.totalorder %s3756_s2, %s2297_s13 }
  0x15   : > { %p2304_p3 = scmp.lt.u32.totalorder %s2297_s13, %s3756_s2 }
  0x16   : > { %p2299_p0 = pneg %p2520_p12 }
  0x18   : > { %p2300_p1 = pnand %p2299_p0, %p2298_p13 }
  0x1a   : > { %p2301_p2 = pneg %p2300_p1 }
  0x1c   : > { %p2306_p4 = pnand %p2304_p3, %p2301_p2 }
  0x1e   : > { %2309 = shalt.err (!%p2306_p4)
}
  0x1f   : > { %s2310_s23 = scalar_lea.vmem %s177_s7, 4096  ;;  %p2318_p9 = scmp.lt.s32.totalorder %s177_s7, %s177_s7 }
  0x20   : > { %p2311_p7 = scmp.ne.s32.totalorder %s177_s7, %s2310_s23  ;;  %p2319_p6 = scmp.lt.s32.totalorder %s2310_s23, %s2310_s23 }
  0x22   : > { %p2313_p8 = pnand %p2311_p7, %p2299_p0  ;;  %p2320_p5 = por %p2319_p6, %p2318_p9 }
  0x24   : > { %p2314_p11 = pneg %p2313_p8 }
  0x26   : > { %p2321_p10 = pnand %p2320_p5, %p2314_p11 }
  0x28   : > { %2324 = shalt.err (!%p2321_p10)
}
  0x29   : > { %s2427_s25 = smov 128   ;;  %s2428_s26 = smov 8  }
  0x2a   : > { %2072 = dma.hbm_to_vmem [thread:$0]  (!%p2520_p12), %s3756_s2, 4096, %s177_s7, [#allocation3], %s2427_s25, %s2427_s25, %s2428_s26  }
  0x2b   : > { %s2325_s13 = scalar_lea.hbm %s3758_s4, 256 }
  0x2c   : > { %p2326_p13 = scmp.ne.s32.totalorder %s3758_s4, %s2325_s13  ;;  %p2332_p9 = scmp.lt.u32.totalorder %s2325_s13, %s3758_s4 }
  0x2e   : > { %p2328_p5 = pnand %p2326_p13, %p2299_p0 }
  0x30   : > { %p2329_p6 = pneg %p2328_p5 }
  0x32   : > { %p2334_p10 = pnand %p2332_p9, %p2329_p6 }
  0x34   : > { %2337 = shalt.err (!%p2334_p10)
}
  0x35   : > { %s2338_s7 = scalar_lea.vmem %s2524_s10, 256  ;;  %p2346_p4 = scmp.lt.s32.totalorder %s2524_s10, %s2524_s10 }
  0x36   : > { %p2339_p1 = scmp.ne.s32.totalorder %s2524_s10, %s2338_s7  ;;  %p2347_p7 = scmp.lt.s32.totalorder %s2338_s7, %s2338_s7 }
  0x38   : > { %p2341_p2 = pnand %p2339_p1, %p2299_p0  ;;  %p2348_p8 = por %p2347_p7, %p2346_p4 }
  0x3a   : > { %p2342_p3 = pneg %p2341_p2 }
  0x3c   : > { %p2349_p11 = pnand %p2348_p8, %p2342_p3 }
  0x3e   : > { %2352 = shalt.err (!%p2349_p11)
}
  0x3f   : > { %2075 = dma.hbm_to_vmem [thread:$0]  (!%p2520_p12), %s3758_s4, 256, %s2524_s10, [#allocation6]  }
  0x40   : > { %p3794_p13 = scmp.ne.s32.totalorder %s3792_s30, 0 }
  0x41   : > { %p3795_p5 = scmp.eq.s32.totalorder (!%p3794_p13), %s2484_s22, 0 }
  0x42   : > { %215 = sbr.rel (%p3794_p13) target bundleno = 1462 (0x5b6), region = 40 }
  0x49   : > { %2398 = dma.done.wait (%p3795_p5), [#allocation3], 4096   ;;  %p3796_p0 = pmov %p3795_p5 }
  0x4b   : > { %2400 = vsyncadd (%p3796_p0), [#allocation3], 4294963200  ;;  %p3797_p6 = pmov %p3796_p0 }
  0x4c   : > { %p3798_p9 = pmov %p3796_p0 }
  0x4d   : > { %2402 = dma.done.wait (%p3797_p6), [#allocation6], 256  }
  0x4e   : > { %2404 = vsyncadd (%p3798_p9), [#allocation6], 4294967040  ;;  %s1921_s8 = sshll.u32 %s2484_s22, 4  ;;  %v2429_v0 = vmov 0   ;;  %v2124_v1 = vld [vmem:[%s3755_s1 + $0x4] ss:$8 sps:$4 sm:$0xff]   ;;  %v275_v11 = vlaneseq }
  0x4f   : > { %390 = vmatprep.mubr.bf16.mxu0 %v2429_v0  ;;  %p248_p12 = scmp.lt.s32.totalorder %s1921_s8, 31  ;;  %v2126_v2 = vld [vmem:[%s3755_s1] ss:$8 sps:$4 sm:$0xff]   ;;  %358 = vmatprep.subr.bf16.mxu0 %v2124_v1  ;;  %vm333_vm0 = vcmask 130048   ;;  %s244_s14 = sand.u32 1, %s2415_s19  }
  0x50   : > { %359 = vmatpush1.bf16.msra.mxu0 %v2126_v2  ;;  %v2601_v12 = vshrl.u32 %v275_v11, 7  ;;  %v2604_v14 = vld [vmem:[#allocation5] sm:$0xff]  ;;  %v2606_v15 = vld [vmem:[#allocation5 + $0x8] sm:$0xff]  ;;  %s1920_s15 = sshll.u32 %s244_s14, 7  ;;  %s1994_s17 = sshll.u32 %s2484_s22, 11 }
  0x51   : > { %s3833_s8 = smov (!%p248_p12, %s1921_s8), 31  ;;  %s3672_s16 = scalar_lea.vmem [#allocation7], %s1920_s15 }
  0x52   : > { %s1922_s30 = sshll.u32 %s3833_s8, 2  ;;  %v277_v13 = vsub.s32 0, %v2601_v12  ;;  %s1828_s7 = sshll.u32 %s3672_s16, 4  ;;  %s3707_s7 = int_to_ptr.vmem [resolvable:$true] %s1828_s7 }
  0x53   : > { %s251_s6 = scalar_lea.vmem %s3754_s0, %s1922_s30  ;;  %s3705_s8 = scalar_lea.hbm %s3759_s5, %s1994_s17 }
  0x54   : > { %v2127_v3 = vld [vmem:[%s251_s6] sm:$0xff]   ;;  %v2128_v4 = vld [vmem:[%s251_s6 + $0x8] sm:$0xff]   ;;  %v2129_v5 = vld [vmem:[%s251_s6 + $0x10] sm:$0xff]   ;;  %v2609_v16 = vrot.slane %v2604_v14, %v277_v13  ;;  %v2612_v17 = vrot.slane %v2606_v15, %v277_v13  ;;  %s3713_s30 = scalar_lea.sflag [#allocation4], %s244_s14  ;;  %s2353_s10 = scalar_lea.vmem %s3707_s7, 2048 }
  0x55   : > { %1933 = vmatmul.mubr.msk.bf16.vlgmr.msra.gmra.mrb[0].mxu0 %vm333_vm0, %v2127_v3  ;;  %v2130_v6 = vld [vmem:[%s251_s6 + $0x18] sm:$0xff]   ;;  %v2131_v7 = vld [vmem:[%s251_s6 + $0x20] sm:$0xff]   ;;  %v2132_v8 = vld [vmem:[%s251_s6 + $0x28] sm:$0xff]   ;;  %p2354_p10 = scmp.ne.s32.totalorder %s3707_s7, %s2353_s10  ;;  %p3826_p1 = scmp.ne.s32.totalorder %s3790_s28, 0 }
  0x56   : > { %400 = vmatprep.mubr.bf16.mxu0 %v2429_v0  ;;  %v2133_v9 = vld [vmem:[%s251_s6 + $0x30] sm:$0xff]   ;;  %v2134_v10 = vld [vmem:[%s251_s6 + $0x38] sm:$0xff]   ;;  %s2430_s22 = smov [#allocation7]  }
  0x57   : > { %p2355_p2 = pnand %p2354_p10, %p3826_p1  ;;  %s2357_s26 = sshll.u32 %s2430_s22, 4  ;;  %s2358_s26 = int_to_ptr.vmem [resolvable:$false] %s2357_s26 }
  0x58   : > { %s2359_s6 = scalar_lea.vmem %s2358_s26, 4096  ;;  %p2360_p4 = scmp.lt.s32.totalorder %s3707_s7, %s2358_s26 }
  0x59   : > { %p2356_p3 = pneg %p2355_p2  ;;  %p2361_p7 = scmp.lt.s32.totalorder %s2359_s6, %s2353_s10 }
  0x5b   : > { %p2362_p8 = por %p2361_p7, %p2360_p4 }
  0x5d   : > { %1934 = vmatmul.mubr.msk.bf16.gmra.mrb[4].mxu0 %vm333_vm0, %v2128_v4  ;;  %p2363_p11 = pnand %p2362_p8, %p2356_p3 }
  0x5e   : > { %410 = vmatprep.mubr.bf16.mxu0 %v2429_v0 }
  0x65   : > { %1935 = vmatmul.mubr.msk.bf16.gmra.mrb[8].mxu0 %vm333_vm0, %v2129_v5 }
  0x66   : > { %420 = vmatprep.mubr.bf16.mxu0 %v2429_v0 }
  0x6d   : > { %1936 = vmatmul.mubr.msk.bf16.gmra.mrb[12].mxu0 %vm333_vm0, %v2130_v6 }
  0x6e   : > { %430 = vmatprep.mubr.bf16.mxu0 %v2429_v0 }
  0x75   : > { %1937 = vmatmul.mubr.msk.bf16.gmra.mrb[16].mxu0 %vm333_vm0, %v2131_v7 }
  0x76   : > { %440 = vmatprep.mubr.bf16.mxu0 %v2429_v0 }
  0x7d   : > { %1938 = vmatmul.mubr.msk.bf16.gmra.mrb[20].mxu0 %vm333_vm0, %v2132_v8 }
  0x7e   : > { %450 = vmatprep.mubr.bf16.mxu0 %v2429_v0 }
  0x85   : > { %1939 = vmatmul.mubr.msk.bf16.gmra.mrb[24].mxu0 %vm333_vm0, %v2133_v9 }
  0x86   : > { %460 = vmatprep.mubr.bf16.mxu0 %v2429_v0 }
  0x8d   : > { %1940 = vmatmul.mubr.msk.bf16.gmra.mrb[28].mxu0 %vm333_vm0, %v2134_v10 }
 0x128   : > { %v392_v18 = vpop.f32.mrb[0].mxu0 }
 0x129   : > { %v2615_v19 = vadd.f32 %v392_v18, %v2609_v16  ;;  %v394_v20 = vpop.f32.mrb[1].mxu0 }
 0x12a   : > { %v2618_v21 = vadd.f32 %v394_v20, %v2612_v17  ;;  %v396_v22 = vpop.f32.mrb[2].mxu0 }
 0x12b   : > { %v471_v23 = vmax.f32 %v2615_v19, 0.0  ;;  %v2622_v24 = vadd.f32 %v396_v22, %v2609_v16  ;;  %v398_v25 = vpop.f32.mrb[3].mxu0 }
 0x12c   : > { %v472_v26 = vmax.f32 %v2618_v21, 0.0  ;;  %v2626_v27 = vadd.f32 %v398_v25, %v2612_v17 }
 0x12d   : > { %v473_v28 = vmax.f32 %v2622_v24, 0.0 }
 0x12e   : > { %v474_v29 = vmax.f32 %v2626_v27, 0.0  ;;  %v503_v30 = vadd.f32 %v472_v26, %v471_v23 }
 0x130   : > { %v402_v31 = vpop.f32.mrb[4].mxu0  ;;  %504 = vadd.xlane.f32.xlu0 %v503_v30  ;;  %v506_v36 = vadd.f32 %v474_v29, %v473_v28 }
 0x131   : > { %v2635_v32 = vadd.f32 %v402_v31, %v2609_v16  ;;  %v404_v33 = vpop.f32.mrb[5].mxu0 }
 0x132   : > { %v2638_v34 = vadd.f32 %v404_v33, %v2612_v17  ;;  %v406_v35 = vpop.f32.mrb[6].mxu0 }
 0x133   : > { %v475_v37 = vmax.f32 %v2635_v32, 0.0  ;;  %v2646_v38 = vadd.f32 %v406_v35, %v2609_v16  ;;  %v408_v39 = vpop.f32.mrb[7].mxu0 }
 0x134   : > { %v476_v40 = vmax.f32 %v2638_v34, 0.0  ;;  %v2650_v41 = vadd.f32 %v408_v39, %v2612_v17  ;;  %507 = vadd.xlane.f32.xlu0 %v506_v36 }
 0x135   : > { %v477_v42 = vmax.f32 %v2646_v38, 0.0 }
 0x136   : > { %v478_v43 = vmax.f32 %v2650_v41, 0.0  ;;  %v509_v44 = vadd.f32 %v476_v40, %v475_v37 }
 0x138   : > { %v412_v45 = vpop.f32.mrb[8].mxu0  ;;  %510 = vadd.xlane.f32.xlu1 %v509_v44  ;;  %v512_v50 = vadd.f32 %v478_v43, %v477_v42 }
 0x139   : > { %v2659_v46 = vadd.f32 %v412_v45, %v2609_v16  ;;  %v414_v47 = vpop.f32.mrb[9].mxu0 }
 0x13a   : > { %v2662_v48 = vadd.f32 %v414_v47, %v2612_v17  ;;  %v416_v49 = vpop.f32.mrb[10].mxu0 }
 0x13b   : > { %v479_v51 = vmax.f32 %v2659_v46, 0.0  ;;  %v2670_v52 = vadd.f32 %v416_v49, %v2609_v16  ;;  %v418_v53 = vpop.f32.mrb[11].mxu0 }
 0x13c   : > { %v480_v54 = vmax.f32 %v2662_v48, 0.0  ;;  %v2674_v55 = vadd.f32 %v418_v53, %v2612_v17  ;;  %513 = vadd.xlane.f32.xlu1 %v512_v50  ;;  %v2162_v48 = vld [vmem:[#allocation2 + $0x94] ss:$8 sps:$4 sm:$0xff]  }
 0x13d   : > { %v481_v56 = vmax.f32 %v2670_v52, 0.0 }
 0x13e   : > { %v482_v57 = vmax.f32 %v2674_v55, 0.0  ;;  %v515_v58 = vadd.f32 %v480_v54, %v479_v51 }
 0x140   : > { %v422_v59 = vpop.f32.mrb[12].mxu0  ;;  %516 = vadd.xlane.f32.xlu0 %v515_v58  ;;  %v518_v60 = vadd.f32 %v482_v57, %v481_v56 }
 0x141   : > { %v2687_v61 = vadd.f32 %v422_v59, %v2609_v16  ;;  %v424_v62 = vpop.f32.mrb[13].mxu0 }
 0x142   : > { %v2690_v63 = vadd.f32 %v424_v62, %v2612_v17  ;;  %v426_v0 = vpop.f32.mrb[14].mxu0  ;;  %519 = vadd.xlane.f32.xlu1 %v518_v60 }
 0x143   : > { %v483_v1 = vmax.f32 %v2687_v61, 0.0  ;;  %v2694_v2 = vadd.f32 %v426_v0, %v2609_v16  ;;  %v428_v3 = vpop.f32.mrb[15].mxu0 }
 0x144   : > { %v484_v4 = vmax.f32 %v2690_v63, 0.0  ;;  %v2698_v5 = vadd.f32 %v428_v3, %v2612_v17 }
 0x145   : > { %v485_v6 = vmax.f32 %v2694_v2, 0.0 }
 0x146   : > { %v486_v7 = vmax.f32 %v2698_v5, 0.0  ;;  %v521_v8 = vadd.f32 %v484_v4, %v483_v1 }
 0x148   : > { %v432_v9 = vpop.f32.mrb[16].mxu0  ;;  %522 = vadd.xlane.f32.xlu0 %v521_v8  ;;  %v524_v10 = vadd.f32 %v486_v7, %v485_v6 }
 0x149   : > { %v2711_v11 = vadd.f32 %v432_v9, %v2609_v16  ;;  %v434_v13 = vpop.f32.mrb[17].mxu0 }
 0x14a   : > { %v2714_v18 = vadd.f32 %v434_v13, %v2612_v17  ;;  %v436_v20 = vpop.f32.mrb[18].mxu0  ;;  %525 = vadd.xlane.f32.xlu1 %v524_v10 }
 0x14b   : > { %v3774_v22 = vmax.f32 %v2711_v11, 0.0  ;;  %v2718_v25 = vadd.f32 %v436_v20, %v2609_v16  ;;  %v438_v30 = vpop.f32.mrb[19].mxu0 }
 0x14c   : > { %v3773_v31 = vmax.f32 %v2714_v18, 0.0  ;;  %v2722_v33 = vadd.f32 %v438_v30, %v2612_v17 }
 0x14d   : > { %v3770_v35 = vmax.f32 %v2718_v25, 0.0 }
 0x14e   : > { %v3767_v36 = vmax.f32 %v2722_v33, 0.0  ;;  %v527_v39 = vadd.f32 %v3773_v31, %v3774_v22  ;;  %v2143_v31 = vld [vmem:[#allocation2 + $0x20] ss:$8 sps:$4 sm:$0xff]   ;;  %v2144_v22 = vld [vmem:[#allocation2 + $0x34] ss:$8 sps:$4 sm:$0xff]  }
 0x150   : > { %v442_v44 = vpop.f32.mrb[20].mxu0  ;;  %528 = vadd.xlane.f32.xlu0 %v527_v39  ;;  %v530_v45 = vadd.f32 %v3767_v36, %v3770_v35 }
 0x151   : > { %v2735_v47 = vadd.f32 %v442_v44, %v2609_v16  ;;  %v444_v49 = vpop.f32.mrb[21].mxu0 }
 0x152   : > { %v2738_v50 = vadd.f32 %v444_v49, %v2612_v17  ;;  %v446_v53 = vpop.f32.mrb[22].mxu0  ;;  %531 = vadd.xlane.f32.xlu1 %v530_v45 }
 0x153   : > { %v3766_v58 = vmax.f32 %v2735_v47, 0.0  ;;  %v2742_v59 = vadd.f32 %v446_v53, %v2609_v16  ;;  %v448_v60 = vpop.f32.mrb[23].mxu0 }
 0x154   : > { %v3765_v62 = vmax.f32 %v2738_v50, 0.0  ;;  %v2746_v0 = vadd.f32 %v448_v60, %v2612_v17 }
 0x155   : > { %v3764_v3 = vmax.f32 %v2742_v59, 0.0 }
 0x156   : > { %v3763_v8 = vmax.f32 %v2746_v0, 0.0  ;;  %v533_v9 = vadd.f32 %v3765_v62, %v3766_v58 }
 0x158   : > { %v452_v10 = vpop.f32.mrb[24].mxu0  ;;  %534 = vadd.xlane.f32.xlu0 %v533_v9  ;;  %v536_v13 = vadd.f32 %v3763_v8, %v3764_v3 }
 0x159   : > { %v2759_v20 = vadd.f32 %v452_v10, %v2609_v16  ;;  %v454_v30 = vpop.f32.mrb[25].mxu0 }
 0x15a   : > { %v2762_v39 = vadd.f32 %v454_v30, %v2612_v17  ;;  %v456_v44 = vpop.f32.mrb[26].mxu0  ;;  %537 = vadd.xlane.f32.xlu1 %v536_v13 }
 0x15b   : > { %v3769_v45 = vmax.f32 %v2759_v20, 0.0  ;;  %v2766_v49 = vadd.f32 %v456_v44, %v2609_v16  ;;  %v458_v53 = vpop.f32.mrb[27].mxu0 }
 0x15c   : > { %v3768_v60 = vmax.f32 %v2762_v39, 0.0  ;;  %v2770_v9 = vadd.f32 %v458_v53, %v2612_v17 }
 0x15d   : > { %v3772_v10 = vmax.f32 %v2766_v49, 0.0 }
 0x15e   : > { %v3771_v8 = vmax.f32 %v2770_v9, 0.0  ;;  %v539_v13 = vadd.f32 %v3768_v60, %v3769_v45 }
 0x160   : > { %v462_v30 = vpop.f32.mrb[28].mxu0  ;;  %540 = vadd.xlane.f32.xlu0 %v539_v13  ;;  %v542_v44 = vadd.f32 %v3771_v8, %v3772_v10  ;;  %v2141_v10 = vld [vmem:[#allocation2 + $0x24] ss:$8 sps:$4 sm:$0xff]  }
 0x161   : > { %v2783_v3 = vadd.f32 %v462_v30, %v2609_v16  ;;  %v464_v53 = vpop.f32.mrb[29].mxu0 }
 0x162   : > { %v2786_v62 = vadd.f32 %v464_v53, %v2612_v17  ;;  %v466_v58 = vpop.f32.mrb[30].mxu0  ;;  %543 = vadd.xlane.f32.xlu1 %v542_v44  ;;  %v2137_v53 = vld [vmem:[#allocation2] ss:$8 sps:$4 sm:$0xff]  }
 0x163   : > { %v3776_v36 = vmax.f32 %v2783_v3, 0.0  ;;  %v2790_v60 = vadd.f32 %v466_v58, %v2609_v16  ;;  %v468_v13 = vpop.f32.mrb[31].mxu0  ;;  %v2135_v58 = vld [vmem:[#allocation2 + $0x4] ss:$8 sps:$4 sm:$0xff]  }
 0x164   : > { %v3775_v45 = vmax.f32 %v2786_v62, 0.0  ;;  %v2794_v35 = vadd.f32 %v468_v13, %v2612_v17  ;;  %v2138_v17 = vld [vmem:[#allocation2 + $0x14] ss:$8 sps:$4 sm:$0xff]   ;;  %1056 = vmatprep.subr.bf16.mxu1 %v2135_v58  ;;  %v2140_v13 = vld [vmem:[#allocation2 + $0x10] ss:$8 sps:$4 sm:$0xff]  }
 0x165   : > { %v501_v30 = vmax.f32 %v2790_v60, 0.0  ;;  %1057 = vmatpush1.bf16.msra.mxu1 %v2137_v53  ;;  %v2153_v58 = vld [vmem:[#allocation2 + $0x64] ss:$8 sps:$4 sm:$0xff]   ;;  %v2155_v53 = vld [vmem:[#allocation2 + $0x60] ss:$8 sps:$4 sm:$0xff]  }
 0x166   : > { %v3777_v8 = vmax.f32 %v2794_v35, 0.0  ;;  %v545_v44 = vadd.f32 %v3775_v45, %v3776_v36  ;;  %1058 = vmatprep.subr.bf16.mxu1 %v2138_v17  ;;  %v2147_v45 = vld [vmem:[#allocation2 + $0x44] ss:$8 sps:$4 sm:$0xff]   ;;  %v2149_v36 = vld [vmem:[#allocation2 + $0x40] ss:$8 sps:$4 sm:$0xff]  }
 0x167   : > { %v2156_v17 = vld [vmem:[#allocation2 + $0x74] ss:$8 sps:$4 sm:$0xff]  }
 0x168   : > { %546 = vadd.xlane.f32.xlu0 %v545_v44  ;;  %v548_v16 = vadd.f32 %v3777_v8, %v501_v30  ;;  %v2146_v44 = vld [vmem:[#allocation2 + $0x30] ss:$8 sps:$4 sm:$0xff]  }
 0x169   : > { %1059 = vmatpush1.bf16.msra.mxu1 %v2140_v13  ;;  %v2152_v8 = vld [vmem:[#allocation2 + $0x50] ss:$8 sps:$4 sm:$0xff]  }
 0x16a   : > { %549 = vadd.xlane.f32.xlu1 %v548_v16  ;;  %1060 = vmatprep.subr.bf16.mxu1 %v2141_v10  ;;  %v2150_v16 = vld [vmem:[#allocation2 + $0x54] ss:$8 sps:$4 sm:$0xff]   ;;  %v2158_v13 = vld [vmem:[#allocation2 + $0x70] ss:$8 sps:$4 sm:$0xff]   ;;  %v2159_v10 = vld [vmem:[#allocation2 + $0x84] ss:$8 sps:$4 sm:$0xff]  }
 0x16d   : > { %1061 = vmatpush1.bf16.msra.mxu1 %v2143_v31  ;;  %v2161_v31 = vld [vmem:[#allocation2 + $0x80] ss:$8 sps:$4 sm:$0xff]  }
 0x16e   : > { %1062 = vmatprep.subr.bf16.mxu1 %v2144_v22 }
 0x171   : > { %1063 = vmatpush1.bf16.msra.mxu1 %v2146_v44 }
 0x172   : > { %1064 = vmatprep.subr.bf16.mxu1 %v2147_v45 }
 0x175   : > { %1065 = vmatpush1.bf16.msra.mxu1 %v2149_v36 }
 0x176   : > { %1066 = vmatprep.subr.bf16.mxu1 %v2150_v16 }
 0x179   : > { %1067 = vmatpush1.bf16.msra.mxu1 %v2152_v8 }
 0x17a   : > { %1068 = vmatprep.subr.bf16.mxu1 %v2153_v58 }
 0x17d   : > { %1069 = vmatpush1.bf16.msra.mxu1 %v2155_v53 }
 0x17e   : > { %1070 = vmatprep.subr.bf16.mxu1 %v2156_v17 }
 0x181   : > { %1071 = vmatpush1.bf16.msra.mxu1 %v2158_v13 }
 0x182   : > { %1072 = vmatprep.subr.bf16.mxu1 %v2159_v10 }
 0x185   : > { %1073 = vmatpush1.bf16.msra.mxu1 %v2161_v31 }
 0x186   : > { %1074 = vmatprep.subr.bf16.mxu1 %v2162_v48 }
 0x1bd   : > { %v505_v22 = vpop.xlane.xlu0 %504 }
 0x1be   : > { %v552_v44 = vmul.f32 0.00390625, %v505_v22 }
 0x1c0   : > { %v2808_v36 = vsub.f32 %v471_v23, %v552_v44  ;;  %v2812_v8 = vsub.f32 %v472_v26, %v552_v44 }
 0x1c1   : > { %v508_v45 = vpop.xlane.xlu0 %507 }
 0x1c2   : > { %v553_v16 = vmul.f32 0.00390625, %v508_v45  ;;  %v600_v58 = vmul.f32 %v2808_v36, %v2808_v36  ;;  %v601_v53 = vmul.f32 %v2812_v8, %v2812_v8 }
 0x1c4   : > { %v2820_v17 = vsub.f32 %v473_v28, %v553_v16  ;;  %v2824_v19 = vsub.f32 %v474_v29, %v553_v16  ;;  %v632_v23 = vadd.f32 %v601_v53, %v600_v58 }
 0x1c5   : > { %v511_v21 = vpop.xlane.xlu1 %510 }
 0x1c6   : > { %v554_v26 = vmul.f32 0.00390625, %v511_v21  ;;  %633 = vadd.xlane.f32.xlu0 %v632_v23  ;;  %v602_v13 = vmul.f32 %v2820_v17, %v2820_v17  ;;  %v603_v10 = vmul.f32 %v2824_v19, %v2824_v19 }
 0x1c8   : > { %v2832_v31 = vsub.f32 %v475_v37, %v554_v26  ;;  %v2836_v24 = vsub.f32 %v476_v40, %v554_v26  ;;  %v635_v27 = vadd.f32 %v603_v10, %v602_v13  ;;  %v2165_v10 = vld [vmem:[#allocation2 + $0xa4] ss:$8 sps:$4 sm:$0xff]  }
 0x1c9   : > { %v514_v28 = vpop.xlane.xlu1 %513 }
 0x1ca   : > { %v555_v29 = vmul.f32 0.00390625, %v514_v28  ;;  %636 = vadd.xlane.f32.xlu1 %v635_v27  ;;  %v604_v22 = vmul.f32 %v2832_v31, %v2832_v31  ;;  %v605_v44 = vmul.f32 %v2836_v24, %v2836_v24  ;;  %v2167_v28 = vld [vmem:[#allocation2 + $0xa0] ss:$8 sps:$4 sm:$0xff]  }
 0x1cc   : > { %v2844_v45 = vsub.f32 %v477_v42, %v555_v29  ;;  %v2848_v32 = vsub.f32 %v478_v43, %v555_v29  ;;  %v638_v34 = vadd.f32 %v605_v44, %v604_v22 }
 0x1cd   : > { %v517_v37 = vpop.xlane.xlu0 %516 }
 0x1ce   : > { %v556_v40 = vmul.f32 0.00390625, %v517_v37  ;;  %639 = vadd.xlane.f32.xlu0 %v638_v34  ;;  %v606_v16 = vmul.f32 %v2844_v45, %v2844_v45  ;;  %v607_v58 = vmul.f32 %v2848_v32, %v2848_v32 }
 0x1cf   : > { %v520_v53 = vpop.xlane.xlu1 %519 }
 0x1d0   : > { %v2856_v38 = vsub.f32 %v479_v51, %v556_v40  ;;  %v2860_v41 = vsub.f32 %v480_v54, %v556_v40  ;;  %v557_v42 = vmul.f32 0.00390625, %v520_v53  ;;  %v641_v43 = vadd.f32 %v607_v58, %v606_v16  ;;  %v2164_v54 = vld [vmem:[#allocation2 + $0x90] ss:$8 sps:$4 sm:$0xff]   ;;  %v2171_v58 = vld [vmem:[#allocation2 + $0xc4] ss:$8 sps:$4 sm:$0xff]  }
 0x1d1   : > { %1075 = vmatpush1.bf16.msra.mxu1 %v2164_v54 }
 0x1d2   : > { %v2864_v23 = vsub.f32 %v481_v56, %v557_v42  ;;  %v2868_v21 = vsub.f32 %v482_v57, %v557_v42  ;;  %642 = vadd.xlane.f32.xlu1 %v641_v43  ;;  %v608_v46 = vmul.f32 %v2856_v38, %v2856_v38  ;;  %v609_v51 = vmul.f32 %v2860_v41, %v2860_v41  ;;  %v2173_v42 = vld [vmem:[#allocation2 + $0xc0] ss:$8 sps:$4 sm:$0xff]  }
 0x1d3   : > { %1076 = vmatprep.subr.bf16.mxu1 %v2165_v10  ;;  %v3799_v43 = vmax.f32 %v2711_v11, 0.0 }
 0x1d4   : > { %v644_v26 = vadd.f32 %v609_v51, %v608_v46  ;;  %v610_v13 = vmul.f32 %v2864_v23, %v2864_v23  ;;  %v611_v52 = vmul.f32 %v2868_v21, %v2868_v21  ;;  %v3800_v51 = vmax.f32 %v2714_v18, 0.0 }
 0x1d5   : > { %v523_v55 = vpop.xlane.xlu0 %522  ;;  %1077 = vmatpush1.bf16.msra.mxu1 %v2167_v28 }
 0x1d6   : > { %v558_v56 = vmul.f32 0.00390625, %v523_v55  ;;  %645 = vadd.xlane.f32.xlu0 %v644_v26  ;;  %v647_v57 = vadd.f32 %v611_v52, %v610_v13  ;;  %v3801_v26 = vmax.f32 %v2718_v25, 0.0  ;;  %v3802_v52 = vmax.f32 %v2722_v33, 0.0 }
 0x1d7   : > { %v526_v27 = vpop.xlane.xlu1 %525 }
 0x1d8   : > { %v2880_v29 = vsub.f32 %v483_v1, %v558_v56  ;;  %v2884_v22 = vsub.f32 %v484_v4, %v558_v56  ;;  %v559_v44 = vmul.f32 0.00390625, %v526_v27  ;;  %648 = vadd.xlane.f32.xlu1 %v647_v57  ;;  %v2168_v1 = vld [vmem:[#allocation2 + $0xb4] ss:$8 sps:$4 sm:$0xff]   ;;  %v2170_v4 = vld [vmem:[#allocation2 + $0xb0] ss:$8 sps:$4 sm:$0xff]  }
 0x1d9   : > { %1078 = vmatprep.subr.bf16.mxu1 %v2168_v1  ;;  %v2174_v56 = vld [vmem:[#allocation2 + $0xd4] ss:$8 sps:$4 sm:$0xff]   ;;  %v2176_v57 = vld [vmem:[#allocation2 + $0xd0] ss:$8 sps:$4 sm:$0xff]   ;;  %v2179_v1 = vld [vmem:[#allocation2 + $0xe0] ss:$8 sps:$4 sm:$0xff]  }
 0x1da   : > { %v2888_v34 = vsub.f32 %v485_v6, %v559_v44  ;;  %v2892_v37 = vsub.f32 %v486_v7, %v559_v44  ;;  %v612_v61 = vmul.f32 %v2880_v29, %v2880_v29  ;;  %v613_v63 = vmul.f32 %v2884_v22, %v2884_v22  ;;  %1079 = vmatpush1.bf16.msra.mxu1 %v2170_v4 }
 0x1db   : > { %1080 = vmatprep.subr.bf16.mxu1 %v2171_v58  ;;  %v3803_v4 = vmax.f32 %v2735_v47, 0.0  ;;  %v3806_v58 = vmax.f32 %v2746_v0, 0.0 }
 0x1dc   : > { %v650_v40 = vadd.f32 %v613_v63, %v612_v61  ;;  %v614_v16 = vmul.f32 %v2888_v34, %v2888_v34  ;;  %v615_v2 = vmul.f32 %v2892_v37, %v2892_v37  ;;  %v2177_v61 = vld [vmem:[#allocation2 + $0xe4] ss:$8 sps:$4 sm:$0xff]  }
 0x1dd   : > { %v529_v6 = vpop.xlane.xlu0 %528 }
 0x1de   : > { %v560_v5 = vmul.f32 0.00390625, %v529_v6  ;;  %651 = vadd.xlane.f32.xlu0 %v650_v40  ;;  %v653_v7 = vadd.f32 %v615_v2, %v614_v16  ;;  %1081 = vmatpush1.bf16.msra.mxu1 %v2173_v42  ;;  %v3804_v16 = vmax.f32 %v2738_v50, 0.0  ;;  %v2180_v42 = vld [vmem:[#allocation2 + $0xf4] ss:$8 sps:$4 sm:$0xff]  }
 0x1df   : > { %v532_v53 = vpop.xlane.xlu1 %531  ;;  %1082 = vmatprep.subr.bf16.mxu1 %v2174_v56 }
 0x1e0   : > { %v2904_v46 = vsub.f32 %v3799_v43, %v560_v5  ;;  %v2908_v48 = vsub.f32 %v3800_v51, %v560_v5  ;;  %v561_v54 = vmul.f32 0.00390625, %v532_v53  ;;  %654 = vadd.xlane.f32.xlu1 %v653_v7  ;;  %v3805_v5 = vmax.f32 %v2742_v59, 0.0  ;;  %v2182_v43 = vld [vmem:[#allocation2 + $0xf0] ss:$8 sps:$4 sm:$0xff]  }
 0x1e2   : > { %v2912_v13 = vsub.f32 %v3801_v26, %v561_v54  ;;  %v2916_v55 = vsub.f32 %v3802_v52, %v561_v54  ;;  %v616_v11 = vmul.f32 %v2904_v46, %v2904_v46  ;;  %v617_v18 = vmul.f32 %v2908_v48, %v2908_v48  ;;  %1083 = vmatpush1.bf16.msra.mxu1 %v2176_v57 }
 0x1e3   : > { %1084 = vmatprep.subr.bf16.mxu1 %v2177_v61  ;;  %v3808_v57 = vmax.f32 %v2762_v39, 0.0 }
 0x1e4   : > { %v656_v10 = vadd.f32 %v617_v18, %v616_v11  ;;  %v618_v27 = vmul.f32 %v2912_v13, %v2912_v13  ;;  %v619_v25 = vmul.f32 %v2916_v55, %v2916_v55  ;;  %v3807_v18 = vmax.f32 %v2759_v20, 0.0 }
 0x1e5   : > { %v535_v28 = vpop.xlane.xlu0 %534 }
 0x1e6   : > { %v562_v33 = vmul.f32 0.00390625, %v535_v28  ;;  %657 = vadd.xlane.f32.xlu0 %v656_v10  ;;  %v659_v44 = vadd.f32 %v619_v25, %v618_v27  ;;  %1085 = vmatpush1.bf16.msra.mxu1 %v2179_v1  ;;  %v3809_v25 = vmax.f32 %v2766_v49, 0.0 }
 0x1e7   : > { %v538_v63 = vpop.xlane.xlu1 %537  ;;  %1086 = vmatprep.subr.bf16.mxu1 %v2180_v42 }
 0x1e8   : > { %v2928_v40 = vsub.f32 %v3803_v4, %v562_v33  ;;  %v2932_v2 = vsub.f32 %v3804_v16, %v562_v33  ;;  %v563_v6 = vmul.f32 0.00390625, %v538_v63  ;;  %660 = vadd.xlane.f32.xlu1 %v659_v44  ;;  %v3810_v33 = vmax.f32 %v2770_v9, 0.0 }
 0x1ea   : > { %v2936_v7 = vsub.f32 %v3805_v5, %v563_v6  ;;  %v2940_v53 = vsub.f32 %v3806_v58, %v563_v6  ;;  %v620_v47 = vmul.f32 %v2928_v40, %v2928_v40  ;;  %v621_v50 = vmul.f32 %v2932_v2, %v2932_v2  ;;  %1087 = vmatpush1.bf16.msra.mxu1 %v2182_v43 }
 0x1eb   : > { %v3811_v6 = vmax.f32 %v2783_v3, 0.0  ;;  %v3812_v58 = vmax.f32 %v2786_v62, 0.0  ;;  %v3813_v43 = vmax.f32 %v2794_v35, 0.0 }
 0x1ec   : > { %v662_v51 = vadd.f32 %v621_v50, %v620_v47  ;;  %v622_v54 = vmul.f32 %v2936_v7, %v2936_v7  ;;  %v623_v59 = vmul.f32 %v2940_v53, %v2940_v53 }
 0x1ed   : > { %v541_v26 = vpop.xlane.xlu0 %540 }
 0x1ee   : > { %v564_v0 = vmul.f32 0.00390625, %v541_v26  ;;  %663 = vadd.xlane.f32.xlu0 %v662_v51  ;;  %v665_v52 = vadd.f32 %v623_v59, %v622_v54 }
 0x1ef   : > { %v544_v11 = vpop.xlane.xlu1 %543 }
 0x1f0   : > { %v2952_v56 = vsub.f32 %v3807_v18, %v564_v0  ;;  %v2956_v10 = vsub.f32 %v3808_v57, %v564_v0  ;;  %v565_v27 = vmul.f32 0.00390625, %v544_v11  ;;  %666 = vadd.xlane.f32.xlu1 %v665_v52 }
 0x1f2   : > { %v2960_v28 = vsub.f32 %v3809_v25, %v565_v27  ;;  %v2964_v44 = vsub.f32 %v3810_v33, %v565_v27  ;;  %v624_v61 = vmul.f32 %v2952_v56, %v2952_v56  ;;  %v625_v20 = vmul.f32 %v2956_v10, %v2956_v10 }
 0x1f3   : > { %v762_v33 = vsub.s32 1, %v2601_v12 }
 0x1f4   : > { %v668_v63 = vadd.f32 %v625_v20, %v624_v61  ;;  %v626_v39 = vmul.f32 %v2960_v28, %v2960_v28  ;;  %v627_v1 = vmul.f32 %v2964_v44, %v2964_v44 }
 0x1f5   : > { %v547_v49 = vpop.xlane.xlu0 %546 }
 0x1f6   : > { %v566_v4 = vmul.f32 0.00390625, %v547_v49  ;;  %669 = vadd.xlane.f32.xlu0 %v668_v63  ;;  %v671_v16 = vadd.f32 %v627_v1, %v626_v39  ;;  %v802_v63 = vsub.s32 2, %v2601_v12  ;;  %v3001_v49 = vrot.slane %v2606_v15, %v762_v33 }
 0x1f7   : > { %v550_v9 = vpop.xlane.xlu1 %549 }
 0x1f8   : > { %v2976_v5 = vsub.f32 %v3811_v6, %v566_v4  ;;  %v2980_v47 = vsub.f32 %v3812_v58, %v566_v4  ;;  %v567_v50 = vmul.f32 0.00390625, %v550_v9  ;;  %672 = vadd.xlane.f32.xlu1 %v671_v16  ;;  %v3004_v4 = vrot.slane %v2604_v14, %v762_v33 }
 0x1fa   : > { %v2984_v42 = vsub.f32 %v501_v30, %v567_v50  ;;  %v2988_v51 = vsub.f32 %v3813_v43, %v567_v50  ;;  %v628_v54 = vmul.f32 %v2976_v5, %v2976_v5  ;;  %v629_v3 = vmul.f32 %v2980_v47, %v2980_v47 }
 0x1fb   : > { %v3009_v43 = vrot.slane %v2606_v15, %v802_v63 }
 0x1fc   : > { %v674_v59 = vadd.f32 %v629_v3, %v628_v54  ;;  %v630_v62 = vmul.f32 %v2984_v42, %v2984_v42  ;;  %v631_v26 = vmul.f32 %v2988_v51, %v2988_v51  ;;  %v3012_v54 = vrot.slane %v2604_v14, %v802_v63 }
 0x1fe   : > { %675 = vadd.xlane.f32.xlu0 %v674_v59  ;;  %v677_v60 = vadd.f32 %v631_v26, %v630_v62 }
 0x200   : > { %678 = vadd.xlane.f32.xlu1 %v677_v60 }
 0x253   : > { %v634_v30 = vpop.xlane.xlu0 %633 }
 0x254   : > { %v680_v35 = vmul.f32 0.00390625, %v634_v30 }
 0x256   : > { %v696_v0 = vadd.f32 1e-05, %v680_v35 }
 0x257   : > { %v637_v52 = vpop.xlane.xlu1 %636 }
 0x258   : > { %2199 = vrsqrt.f32 %v696_v0  ;;  %v681_v11 = vmul.f32 0.00390625, %v637_v52 }
 0x25a   : > { %v697_v18 = vadd.f32 1e-05, %v681_v11 }
 0x25b   : > { %v640_v57 = vpop.xlane.xlu0 %639 }
 0x25c   : > { %2201 = vrsqrt.f32 %v697_v18  ;;  %v682_v27 = vmul.f32 0.00390625, %v640_v57 }
 0x25e   : > { %v698_v25 = vadd.f32 1e-05, %v682_v27 }
 0x25f   : > { %v643_v61 = vpop.xlane.xlu1 %642 }
 0x260   : > { %2203 = vrsqrt.f32 %v698_v25  ;;  %v683_v20 = vmul.f32 0.00390625, %v643_v61 }
 0x262   : > { %v2200_v39 = vpop.eup %2199  ;;  %v699_v1 = vadd.f32 1e-05, %v683_v20 }
 0x263   : > { %v646_v16 = vpop.xlane.xlu0 %645  ;;  %v729_v9 = vmul.f32 %v2200_v39, %v2812_v8  ;;  %v728_v6 = vmul.f32 %v2200_v39, %v2808_v36 }
 0x264   : > { %2205 = vrsqrt.f32 %v699_v1  ;;  %v684_v58 = vmul.f32 0.00390625, %v646_v16 }
 0x265   : > { %v649_v50 = vpop.xlane.xlu1 %648  ;;  %v769_v26 = vmul.f32 %v3001_v49, %v729_v9  ;;  %v768_v60 = vmul.f32 %v3004_v4, %v728_v6 }
 0x266   : > { %v2202_v3 = vpop.eup %2201  ;;  %v700_v59 = vadd.f32 1e-05, %v684_v58  ;;  %v685_v62 = vmul.f32 0.00390625, %v649_v50 }
 0x267   : > { %v731_v8 = vmul.f32 %v2202_v3, %v2824_v19  ;;  %v730_v36 = vmul.f32 %v2202_v3, %v2820_v17  ;;  %v809_v14 = vadd.f32 %v3009_v43, %v769_v26  ;;  %v808_v52 = vadd.f32 %v3012_v54, %v768_v60 }
 0x268   : > { %2207 = vrsqrt.f32 %v700_v59  ;;  %v701_v30 = vadd.f32 1e-05, %v685_v62 }
 0x269   : > { %v771_v35 = vmul.f32 %v3001_v49, %v731_v8  ;;  %v770_v15 = vmul.f32 %v3004_v4, %v730_v36 }
 0x26a   : > { %v2204_v0 = vpop.eup %2203  ;;  %2209 = vrsqrt.f32 %v701_v30 }
 0x26b   : > { %v652_v11 = vpop.xlane.xlu0 %651  ;;  %v811_v18 = vadd.f32 %v3009_v43, %v771_v35  ;;  %v810_v57 = vadd.f32 %v3012_v54, %v770_v15  ;;  %v733_v19 = vmul.f32 %v2204_v0, %v2836_v24  ;;  %v732_v17 = vmul.f32 %v2204_v0, %v2832_v31 }
 0x26c   : > { %v686_v27 = vmul.f32 0.00390625, %v652_v11 }
 0x26d   : > { %v655_v25 = vpop.xlane.xlu1 %654  ;;  %v841_v33 = vpack.c.bf16 %v811_v18, %v809_v14  ;;  %v840_v61 = vpack.c.bf16 %v810_v57, %v808_v52  ;;  %v773_v1 = vmul.f32 %v3001_v49, %v733_v19  ;;  %v772_v6 = vmul.f32 %v3004_v4, %v732_v17 }
 0x26e   : > { %v2206_v20 = vpop.eup %2205  ;;  %v702_v63 = vadd.f32 1e-05, %v686_v27  ;;  %v687_v39 = vmul.f32 0.00390625, %v655_v25 }
 0x26f   : > { %1088 = vmatprep.mubr.bf16.mxu1 %v841_v33  ;;  %v735_v16 = vmul.f32 %v2206_v20, %v2848_v32  ;;  %v734_v9 = vmul.f32 %v2206_v20, %v2844_v45  ;;  %v813_v3 = vadd.f32 %v3009_v43, %v773_v1  ;;  %v812_v32 = vadd.f32 %v3012_v54, %v772_v6 }
 0x270   : > { %2211 = vrsqrt.f32 %v702_v63  ;;  %v703_v24 = vadd.f32 1e-05, %v687_v39  ;;  %1089 = vmatmul.mubr.bf16.vlgmr.msra.gmra.mrb[0].mxu1 %v840_v61 }
 0x271   : > { %v775_v31 = vmul.f32 %v3001_v49, %v735_v16  ;;  %v774_v58 = vmul.f32 %v3004_v4, %v734_v9 }
 0x272   : > { %v2208_v50 = vpop.eup %2207  ;;  %2213 = vrsqrt.f32 %v703_v24 }
 0x273   : > { %v658_v59 = vpop.xlane.xlu0 %657  ;;  %v815_v62 = vadd.f32 %v3009_v43, %v775_v31  ;;  %v814_v45 = vadd.f32 %v3012_v54, %v774_v58  ;;  %v737_v26 = vmul.f32 %v2208_v50, %v2860_v41  ;;  %v736_v36 = vmul.f32 %v2208_v50, %v2856_v38 }
 0x274   : > { %v2210_v60 = vpop.eup %2209  ;;  %v688_v8 = vmul.f32 0.00390625, %v658_v59 }
 0x275   : > { %v661_v30 = vpop.xlane.xlu1 %660  ;;  %v843_v35 = vpack.c.bf16 %v815_v62, %v813_v3  ;;  %v842_v15 = vpack.c.bf16 %v814_v45, %v812_v32  ;;  %v739_v0 = vmul.f32 %v2210_v60, %v2868_v21  ;;  %v777_v14 = vmul.f32 %v3001_v49, %v737_v26 }
 0x276   : > { %v704_v52 = vadd.f32 1e-05, %v688_v8  ;;  %v689_v11 = vmul.f32 0.00390625, %v661_v30  ;;  %v738_v18 = vmul.f32 %v2210_v60, %v2864_v23  ;;  %v776_v19 = vmul.f32 %v3004_v4, %v736_v36 }
 0x277   : > { %1098 = vmatprep.mubr.bf16.mxu1 %v843_v35  ;;  %v779_v57 = vmul.f32 %v3001_v49, %v739_v0  ;;  %v817_v17 = vadd.f32 %v3009_v43, %v777_v14 }
 0x278   : > { %2215 = vrsqrt.f32 %v704_v52  ;;  %v705_v41 = vadd.f32 1e-05, %v689_v11  ;;  %1099 = vmatmul.mubr.bf16.gmra.mrb[4].mxu1 %v842_v15  ;;  %v778_v38 = vmul.f32 %v3004_v4, %v738_v18  ;;  %v816_v39 = vadd.f32 %v3012_v54, %v776_v19 }
 0x279   : > { %v819_v21 = vadd.f32 %v3009_v43, %v779_v57 }
 0x27a   : > { %v2212_v27 = vpop.eup %2211  ;;  %2217 = vrsqrt.f32 %v705_v41  ;;  %v818_v25 = vadd.f32 %v3012_v54, %v778_v38 }
 0x27b   : > { %v664_v33 = vpop.xlane.xlu0 %663  ;;  %v845_v23 = vpack.c.bf16 %v819_v21, %v817_v17  ;;  %v741_v61 = vmul.f32 %v2212_v27, %v2884_v22  ;;  %v740_v1 = vmul.f32 %v2212_v27, %v2880_v29 }
 0x27c   : > { %v2214_v20 = vpop.eup %2213  ;;  %v690_v63 = vmul.f32 0.00390625, %v664_v33  ;;  %v844_v50 = vpack.c.bf16 %v818_v25, %v816_v39 }
 0x27d   : > { %v667_v16 = vpop.xlane.xlu1 %666  ;;  %1108 = vmatprep.mubr.bf16.mxu1 %v845_v23  ;;  %v743_v9 = vmul.f32 %v2214_v20, %v2892_v37  ;;  %v781_v6 = vmul.f32 %v3001_v49, %v741_v61  ;;  %v742_v24 = vmul.f32 %v2214_v20, %v2888_v34  ;;  %v780_v29 = vmul.f32 %v3004_v4, %v740_v1 }
 0x27e   : > { %v706_v31 = vadd.f32 1e-05, %v690_v63  ;;  %v691_v58 = vmul.f32 0.00390625, %v667_v16 }
 0x27f   : > { %v783_v3 = vmul.f32 %v3001_v49, %v743_v9  ;;  %v782_v22 = vmul.f32 %v3004_v4, %v742_v24  ;;  %v821_v62 = vadd.f32 %v3009_v43, %v781_v6  ;;  %v820_v30 = vadd.f32 %v3012_v54, %v780_v29 }
 0x280   : > { %2219 = vrsqrt.f32 %v706_v31  ;;  %v707_v59 = vadd.f32 1e-05, %v691_v58  ;;  %1109 = vmatmul.mubr.bf16.gmra.mrb[8].mxu1 %v844_v50 }
 0x281   : > { %v823_v37 = vadd.f32 %v3009_v43, %v783_v3  ;;  %v822_v34 = vadd.f32 %v3012_v54, %v782_v22 }
 0x282   : > { %v2216_v32 = vpop.eup %2215  ;;  %2221 = vrsqrt.f32 %v707_v59 }
 0x283   : > { %v670_v45 = vpop.xlane.xlu0 %669  ;;  %v847_v26 = vpack.c.bf16 %v823_v37, %v821_v62  ;;  %v745_v60 = vmul.f32 %v2216_v32, %v2908_v48  ;;  %v744_v35 = vmul.f32 %v2216_v32, %v2904_v46  ;;  %v846_v57 = vpack.c.bf16 %v822_v34, %v820_v30 }
 0x284   : > { %v2218_v8 = vpop.eup %2217  ;;  %v692_v36 = vmul.f32 0.00390625, %v670_v45 }
 0x285   : > { %v673_v15 = vpop.xlane.xlu1 %672  ;;  %1118 = vmatprep.mubr.bf16.mxu1 %v847_v26  ;;  %v747_v0 = vmul.f32 %v2218_v8, %v2916_v55  ;;  %v785_v14 = vmul.f32 %v3001_v49, %v745_v60  ;;  %v746_v52 = vmul.f32 %v2218_v8, %v2912_v13  ;;  %v784_v46 = vmul.f32 %v3004_v4, %v744_v35 }
 0x286   : > { %v708_v11 = vadd.f32 1e-05, %v692_v36  ;;  %v693_v18 = vmul.f32 0.00390625, %v673_v15 }
 0x287   : > { %v787_v41 = vmul.f32 %v3001_v49, %v747_v0  ;;  %v786_v48 = vmul.f32 %v3004_v4, %v746_v52  ;;  %v825_v38 = vadd.f32 %v3009_v43, %v785_v14  ;;  %v824_v61 = vadd.f32 %v3012_v54, %v784_v46 }
 0x288   : > { %2223 = vrsqrt.f32 %v708_v11  ;;  %v709_v19 = vadd.f32 1e-05, %v693_v18  ;;  %1119 = vmatmul.mubr.bf16.gmra.mrb[12].mxu1 %v846_v57 }
 0x289   : > { %v827_v55 = vadd.f32 %v3009_v43, %v787_v41  ;;  %v826_v13 = vadd.f32 %v3012_v54, %v786_v48 }
 0x28a   : > { %v2220_v17 = vpop.eup %2219  ;;  %2225 = vrsqrt.f32 %v709_v19 }
 0x28b   : > { %v676_v21 = vpop.xlane.xlu0 %675  ;;  %v849_v27 = vpack.c.bf16 %v827_v55, %v825_v38  ;;  %v749_v25 = vmul.f32 %v2220_v17, %v2932_v2  ;;  %v748_v20 = vmul.f32 %v2220_v17, %v2928_v40  ;;  %v848_v24 = vpack.c.bf16 %v826_v13, %v824_v61 }
 0x28c   : > { %v2222_v33 = vpop.eup %2221  ;;  %v694_v23 = vmul.f32 0.00390625, %v676_v21 }
 0x28d   : > { %v679_v63 = vpop.xlane.xlu1 %678  ;;  %1128 = vmatprep.mubr.bf16.mxu1 %v849_v27  ;;  %v751_v39 = vmul.f32 %v2222_v33, %v2940_v53  ;;  %v789_v1 = vmul.f32 %v3001_v49, %v749_v25  ;;  %v750_v16 = vmul.f32 %v2222_v33, %v2936_v7  ;;  %v788_v40 = vmul.f32 %v3004_v4, %v748_v20 }
 0x28e   : > { %v710_v9 = vadd.f32 1e-05, %v694_v23  ;;  %v695_v6 = vmul.f32 0.00390625, %v679_v63 }
 0x28f   : > { %v791_v31 = vmul.f32 %v3001_v49, %v751_v39  ;;  %v790_v2 = vmul.f32 %v3004_v4, %v750_v16  ;;  %v829_v50 = vadd.f32 %v3009_v43, %v789_v1  ;;  %v828_v62 = vadd.f32 %v3012_v54, %v788_v40 }
 0x290   : > { %2227 = vrsqrt.f32 %v710_v9  ;;  %v711_v58 = vadd.f32 1e-05, %v695_v6  ;;  %1129 = vmatmul.mubr.bf16.gmra.mrb[16].mxu1 %v848_v24 }
 0x291   : > { %v831_v53 = vadd.f32 %v3009_v43, %v791_v31  ;;  %v830_v7 = vadd.f32 %v3012_v54, %v790_v2 }
 0x292   : > { %v2224_v3 = vpop.eup %2223  ;;  %2229 = vrsqrt.f32 %v711_v58 }
 0x293   : > { %v851_v22 = vpack.c.bf16 %v831_v53, %v829_v50  ;;  %v753_v59 = vmul.f32 %v2224_v3, %v2956_v10  ;;  %v752_v37 = vmul.f32 %v2224_v3, %v2952_v56  ;;  %v850_v26 = vpack.c.bf16 %v830_v7, %v828_v62 }
 0x294   : > { %v2226_v29 = vpop.eup %2225 }
 0x295   : > { %1138 = vmatprep.mubr.bf16.mxu1 %v851_v22  ;;  %v755_v32 = vmul.f32 %v2226_v29, %v2964_v44  ;;  %v793_v34 = vmul.f32 %v3001_v49, %v753_v59  ;;  %v754_v45 = vmul.f32 %v2226_v29, %v2960_v28  ;;  %v792_v10 = vmul.f32 %v3004_v4, %v752_v37 }
 0x297   : > { %v795_v60 = vmul.f32 %v3001_v49, %v755_v32  ;;  %v794_v8 = vmul.f32 %v3004_v4, %v754_v45  ;;  %v833_v36 = vadd.f32 %v3009_v43, %v793_v34  ;;  %v832_v28 = vadd.f32 %v3012_v54, %v792_v10 }
 0x298   : > { %1139 = vmatmul.mubr.bf16.gmra.mrb[20].mxu1 %v850_v26 }
 0x299   : > { %v835_v30 = vadd.f32 %v3009_v43, %v795_v60  ;;  %v834_v35 = vadd.f32 %v3012_v54, %v794_v8 }
 0x29a   : > { %v2228_v56 = vpop.eup %2227 }
 0x29b   : > { %v853_v44 = vpack.c.bf16 %v835_v30, %v833_v36  ;;  %v757_v15 = vmul.f32 %v2228_v56, %v2980_v47  ;;  %v756_v14 = vmul.f32 %v2228_v56, %v2976_v5  ;;  %v852_v57 = vpack.c.bf16 %v834_v35, %v832_v28 }
 0x29c   : > { %v2230_v0 = vpop.eup %2229 }
 0x29d   : > { %1148 = vmatprep.mubr.bf16.mxu1 %v853_v44  ;;  %v759_v52 = vmul.f32 %v2230_v0, %v2988_v51  ;;  %v797_v11 = vmul.f32 %v3001_v49, %v757_v15  ;;  %v758_v18 = vmul.f32 %v2230_v0, %v2984_v42  ;;  %v796_v47 = vmul.f32 %v3004_v4, %v756_v14 }
 0x29e   : > { %v890_v42 = vsub.s32 3, %v2601_v12 }
 0x29f   : > { %v799_v41 = vmul.f32 %v3001_v49, %v759_v52  ;;  %v798_v48 = vmul.f32 %v3004_v4, %v758_v18  ;;  %v837_v19 = vadd.f32 %v3009_v43, %v797_v11  ;;  %v836_v51 = vadd.f32 %v3012_v54, %v796_v47  ;;  %v3109_v49 = vld [vmem:[#allocation5] sm:$0xff]  ;;  %v3114_v4 = vld [vmem:[#allocation5 + $0x8] sm:$0xff] }
 0x2a0   : > { %1149 = vmatmul.mubr.bf16.gmra.mrb[24].mxu1 %v852_v57  ;;  %v3112_v17 = vrot.slane %v3109_v49, %v890_v42  ;;  %v3117_v13 = vrot.slane %v3114_v4, %v890_v42 }
 0x2a1   : > { %v839_v46 = vadd.f32 %v3009_v43, %v799_v41  ;;  %v838_v5 = vadd.f32 %v3012_v54, %v798_v48 }
 0x2a3   : > { %v855_v38 = vpack.c.bf16 %v839_v46, %v837_v19  ;;  %v854_v55 = vpack.c.bf16 %v838_v5, %v836_v51 }
 0x2a5   : > { %1158 = vmatprep.mubr.bf16.mxu1 %v855_v38 }
 0x2a8   : > { %1159 = vmatmul.mubr.bf16.gmra.mrb[28].mxu1 %v854_v55 }
 0x343   : > { %v1090_v43 = vpop.f32.mrb[0].mxu1 }
 0x344   : > { %v3120_v21 = vadd.f32 %v1090_v43, %v3112_v17  ;;  %v1092_v54 = vpop.f32.mrb[1].mxu1 }
 0x345   : > { %v3123_v27 = vadd.f32 %v1092_v54, %v3117_v13  ;;  %v1094_v25 = vpop.f32.mrb[2].mxu1 }
 0x346   : > { %v1169_v33 = vmax.f32 %v3120_v21, 0.0  ;;  %v3127_v23 = vadd.f32 %v1094_v25, %v3112_v17  ;;  %v1096_v61 = vpop.f32.mrb[3].mxu1 }
 0x347   : > { %v1170_v20 = vmax.f32 %v3123_v27, 0.0  ;;  %v3131_v63 = vadd.f32 %v1096_v61, %v3117_v13 }
 0x348   : > { %v1171_v39 = vmax.f32 %v3127_v23, 0.0 }
 0x349   : > { %v1172_v1 = vmax.f32 %v3131_v63, 0.0  ;;  %v1201_v16 = vadd.f32 %v1170_v20, %v1169_v33 }
 0x34b   : > { %1202 = vadd.xlane.f32.xlu0 %v1201_v16  ;;  %v1100_v9 = vpop.f32.mrb[4].mxu1  ;;  %v1204_v6 = vadd.f32 %v1172_v1, %v1171_v39 }
 0x34c   : > { %v3144_v24 = vadd.f32 %v1100_v9, %v3112_v17  ;;  %v1102_v31 = vpop.f32.mrb[5].mxu1 }
 0x34d   : > { %v3147_v2 = vadd.f32 %v1102_v31, %v3117_v13  ;;  %1205 = vadd.xlane.f32.xlu1 %v1204_v6  ;;  %v1104_v58 = vpop.f32.mrb[6].mxu1 }
 0x34e   : > { %v1173_v40 = vmax.f32 %v3144_v24, 0.0  ;;  %v3151_v50 = vadd.f32 %v1104_v58, %v3112_v17  ;;  %v1106_v53 = vpop.f32.mrb[7].mxu1 }
 0x34f   : > { %v1174_v3 = vmax.f32 %v3147_v2, 0.0  ;;  %v3155_v7 = vadd.f32 %v1106_v53, %v3117_v13 }
 0x350   : > { %v1175_v22 = vmax.f32 %v3151_v50, 0.0 }
 0x351   : > { %v1176_v59 = vmax.f32 %v3155_v7, 0.0  ;;  %v1207_v29 = vadd.f32 %v1174_v3, %v1173_v40 }
 0x353   : > { %1208 = vadd.xlane.f32.xlu0 %v1207_v29  ;;  %v1110_v62 = vpop.f32.mrb[8].mxu1  ;;  %v1210_v37 = vadd.f32 %v1176_v59, %v1175_v22 }
 0x354   : > { %v3168_v32 = vadd.f32 %v1110_v62, %v3112_v17  ;;  %v1112_v34 = vpop.f32.mrb[9].mxu1 }
 0x355   : > { %v3171_v45 = vadd.f32 %v1112_v34, %v3117_v13  ;;  %1211 = vadd.xlane.f32.xlu1 %v1210_v37  ;;  %v1114_v26 = vpop.f32.mrb[10].mxu1 }
 0x356   : > { %v1177_v60 = vmax.f32 %v3168_v32, 0.0  ;;  %v3175_v8 = vadd.f32 %v1114_v26, %v3112_v17  ;;  %v1116_v10 = vpop.f32.mrb[11].mxu1 }
 0x357   : > { %v1178_v36 = vmax.f32 %v3171_v45, 0.0  ;;  %v3179_v30 = vadd.f32 %v1116_v10, %v3117_v13 }
 0x358   : > { %v1179_v56 = vmax.f32 %v3175_v8, 0.0 }
 0x359   : > { %v1180_v35 = vmax.f32 %v3179_v30, 0.0  ;;  %v1213_v44 = vadd.f32 %v1178_v36, %v1177_v60 }
 0x35b   : > { %1214 = vadd.xlane.f32.xlu0 %v1213_v44  ;;  %v1120_v15 = vpop.f32.mrb[12].mxu1  ;;  %v1216_v0 = vadd.f32 %v1180_v35, %v1179_v56 }
 0x35c   : > { %v3192_v28 = vadd.f32 %v1120_v15, %v3112_v17  ;;  %v1122_v14 = vpop.f32.mrb[13].mxu1 }
 0x35d   : > { %v3195_v52 = vadd.f32 %v1122_v14, %v3117_v13  ;;  %1217 = vadd.xlane.f32.xlu1 %v1216_v0  ;;  %v1124_v11 = vpop.f32.mrb[14].mxu1 }
 0x35e   : > { %v1181_v18 = vmax.f32 %v3192_v28, 0.0  ;;  %v3199_v57 = vadd.f32 %v1124_v11, %v3112_v17  ;;  %v1126_v41 = vpop.f32.mrb[15].mxu1 }
 0x35f   : > { %v1182_v48 = vmax.f32 %v3195_v52, 0.0  ;;  %v3203_v47 = vadd.f32 %v1126_v41, %v3117_v13 }
 0x360   : > { %v1183_v19 = vmax.f32 %v3199_v57, 0.0 }
 0x361   : > { %v1184_v46 = vmax.f32 %v3203_v47, 0.0  ;;  %v1219_v5 = vadd.f32 %v1182_v48, %v1181_v18 }
 0x363   : > { %1220 = vadd.xlane.f32.xlu0 %v1219_v5  ;;  %v1130_v38 = vpop.f32.mrb[16].mxu1  ;;  %v1222_v51 = vadd.f32 %v1184_v46, %v1183_v19 }
 0x364   : > { %v3216_v55 = vadd.f32 %v1130_v38, %v3112_v17  ;;  %v1132_v42 = vpop.f32.mrb[17].mxu1 }
 0x365   : > { %v3219_v43 = vadd.f32 %v1132_v42, %v3117_v13  ;;  %1223 = vadd.xlane.f32.xlu1 %v1222_v51  ;;  %v1134_v54 = vpop.f32.mrb[18].mxu1 }
 0x366   : > { %v1185_v25 = vmax.f32 %v3216_v55, 0.0  ;;  %v3223_v61 = vadd.f32 %v1134_v54, %v3112_v17  ;;  %v1136_v16 = vpop.f32.mrb[19].mxu1 }
 0x367   : > { %v1186_v9 = vmax.f32 %v3219_v43, 0.0  ;;  %v3227_v6 = vadd.f32 %v1136_v16, %v3117_v13 }
 0x368   : > { %v3785_v31 = vmax.f32 %v3223_v61, 0.0 }
 0x369   : > { %v3782_v58 = vmax.f32 %v3227_v6, 0.0  ;;  %v1225_v53 = vadd.f32 %v1186_v9, %v1185_v25 }
 0x36b   : > { %1226 = vadd.xlane.f32.xlu0 %v1225_v53  ;;  %v1140_v29 = vpop.f32.mrb[20].mxu1  ;;  %v1228_v62 = vadd.f32 %v3782_v58, %v3785_v31 }
 0x36c   : > { %v3240_v37 = vadd.f32 %v1140_v29, %v3112_v17  ;;  %v1142_v34 = vpop.f32.mrb[21].mxu1 }
 0x36d   : > { %v3243_v26 = vadd.f32 %v1142_v34, %v3117_v13  ;;  %1229 = vadd.xlane.f32.xlu1 %v1228_v62  ;;  %v1144_v10 = vpop.f32.mrb[22].mxu1 }
 0x36e   : > { %v3781_v44 = vmax.f32 %v3240_v37, 0.0  ;;  %v3247_v15 = vadd.f32 %v1144_v10, %v3112_v17  ;;  %v1146_v0 = vpop.f32.mrb[23].mxu1 }
 0x36f   : > { %v3780_v14 = vmax.f32 %v3243_v26, 0.0  ;;  %v3251_v11 = vadd.f32 %v1146_v0, %v3117_v13 }
 0x370   : > { %v3779_v41 = vmax.f32 %v3247_v15, 0.0 }
 0x371   : > { %v3778_v5 = vmax.f32 %v3251_v11, 0.0  ;;  %v1231_v38 = vadd.f32 %v3780_v14, %v3781_v44 }
 0x373   : > { %1232 = vadd.xlane.f32.xlu0 %v1231_v38  ;;  %v1150_v51 = vpop.f32.mrb[24].mxu1  ;;  %v1234_v42 = vadd.f32 %v3778_v5, %v3779_v41 }
 0x374   : > { %v3264_v54 = vadd.f32 %v1150_v51, %v3112_v17  ;;  %v1152_v16 = vpop.f32.mrb[25].mxu1 }
 0x375   : > { %v3267_v53 = vadd.f32 %v1152_v16, %v3117_v13  ;;  %1235 = vadd.xlane.f32.xlu1 %v1234_v42  ;;  %v1154_v29 = vpop.f32.mrb[26].mxu1 }
 0x376   : > { %v3784_v62 = vmax.f32 %v3264_v54, 0.0  ;;  %v3271_v34 = vadd.f32 %v1154_v29, %v3112_v17  ;;  %v1156_v10 = vpop.f32.mrb[27].mxu1 }
 0x377   : > { %v3783_v0 = vmax.f32 %v3267_v53, 0.0  ;;  %v3275_v38 = vadd.f32 %v1156_v10, %v3117_v13 }
 0x378   : > { %v1195_v51 = vmax.f32 %v3271_v34, 0.0 }
 0x379   : > { %v3786_v5 = vmax.f32 %v3275_v38, 0.0  ;;  %v1237_v42 = vadd.f32 %v3783_v0, %v3784_v62 }
 0x37b   : > { %1238 = vadd.xlane.f32.xlu0 %v1237_v42  ;;  %v1160_v16 = vpop.f32.mrb[28].mxu1  ;;  %v1240_v29 = vadd.f32 %v3786_v5, %v1195_v51 }
 0x37c   : > { %v3288_v41 = vadd.f32 %v1160_v16, %v3112_v17  ;;  %v1162_v10 = vpop.f32.mrb[29].mxu1 }
 0x37d   : > { %v3291_v14 = vadd.f32 %v1162_v10, %v3117_v13  ;;  %1241 = vadd.xlane.f32.xlu1 %v1240_v29  ;;  %v1164_v44 = vpop.f32.mrb[30].mxu1  ;;  %v2185_v10 = vld [vmem:[%s3757_s3 + $0x48] sm:$0xff]  }
 0x37e   : > { %v1197_v58 = vmax.f32 %v3288_v41, 0.0  ;;  %v3295_v0 = vadd.f32 %v1164_v44, %v3112_v17  ;;  %v1166_v42 = vpop.f32.mrb[31].mxu1  ;;  %v2184_v44 = vld [vmem:[%s3757_s3] sm:$0xff]  }
 0x37f   : > { %v3789_v62 = vmax.f32 %v3291_v14, 0.0  ;;  %v3299_v31 = vadd.f32 %v1166_v42, %v3117_v13  ;;  %v2183_v13 = vld [vmem:[%s3757_s3 + $0x40] sm:$0xff]   ;;  %v2186_v42 = vld [vmem:[%s3757_s3 + $0x8] sm:$0xff]  }
 0x380   : > { %v3788_v16 = vmax.f32 %v3295_v0, 0.0  ;;  %1995 = vmatprep.subr.bf16.mxu0 %v2183_v13  ;;  %v2189_v13 = vld [vmem:[%s3757_s3 + $0x58] sm:$0xff]  }
 0x381   : > { %v3787_v5 = vmax.f32 %v3299_v31, 0.0  ;;  %v1243_v29 = vadd.f32 %v3789_v62, %v1197_v58  ;;  %1996 = vmatpush3.bf16.msra.mxu0 %v2184_v44  ;;  %v2190_v44 = vld [vmem:[%s3757_s3 + $0x18] sm:$0xff]  }
 0x382   : > { %1997 = vmatprep.subr.bf16.mxu0 %v2185_v10  ;;  %v2191_v10 = vld [vmem:[%s3757_s3 + $0x60] sm:$0xff]  }
 0x383   : > { %1244 = vadd.xlane.f32.xlu0 %v1243_v29  ;;  %v1246_v17 = vadd.f32 %v3787_v5, %v3788_v16  ;;  %v2187_v29 = vld [vmem:[%s3757_s3 + $0x50] sm:$0xff]  }
 0x385   : > { %1247 = vadd.xlane.f32.xlu1 %v1246_v17  ;;  %1998 = vmatpush3.bf16.msra.mxu0 %v2186_v42  ;;  %v2188_v17 = vld [vmem:[%s3757_s3 + $0x10] sm:$0xff]   ;;  %v2192_v42 = vld [vmem:[%s3757_s3 + $0x20] sm:$0xff]  }
 0x386   : > { %1999 = vmatprep.subr.bf16.mxu0 %v2187_v29 }
 0x389   : > { %2000 = vmatpush3.bf16.msra.mxu0 %v2188_v17 }
 0x38a   : > { %2001 = vmatprep.subr.bf16.mxu0 %v2189_v13 }
 0x38d   : > { %2002 = vmatpush3.bf16.msra.mxu0 %v2190_v44 }
 0x38e   : > { %2003 = vmatprep.subr.bf16.mxu0 %v2191_v10 }
 0x391   : > { %2004 = vmatpush3.bf16.msra.mxu0 %v2192_v42 }
 0x3d8   : > { %v1203_v29 = vpop.xlane.xlu0 %1202 }
 0x3d9   : > { %v1249_v5 = vmul.f32 0.00390625, %v1203_v29 }
 0x3da   : > { %v1206_v16 = vpop.xlane.xlu1 %1205 }
 0x3db   : > { %v3343_v17 = vsub.f32 %v1169_v33, %v1249_v5  ;;  %v3347_v13 = vsub.f32 %v1170_v20, %v1249_v5  ;;  %v1250_v62 = vmul.f32 0.00390625, %v1206_v16 }
 0x3dd   : > { %v3351_v44 = vsub.f32 %v1171_v39, %v1250_v62  ;;  %v3355_v10 = vsub.f32 %v1172_v1, %v1250_v62  ;;  %v1297_v42 = vmul.f32 %v3343_v17, %v3343_v17  ;;  %v1298_v21 = vmul.f32 %v3347_v13, %v3347_v13 }
 0x3df   : > { %v1329_v33 = vadd.f32 %v1298_v21, %v1297_v42  ;;  %v1299_v27 = vmul.f32 %v3351_v44, %v3351_v44  ;;  %v1300_v20 = vmul.f32 %v3355_v10, %v3355_v10 }
 0x3e0   : > { %v1209_v23 = vpop.xlane.xlu0 %1208 }
 0x3e1   : > { %v1251_v39 = vmul.f32 0.00390625, %v1209_v23  ;;  %1330 = vadd.xlane.f32.xlu0 %v1329_v33  ;;  %v1332_v5 = vadd.f32 %v1300_v20, %v1299_v27 }
 0x3e2   : > { %v1212_v63 = vpop.xlane.xlu1 %1211 }
 0x3e3   : > { %v3367_v1 = vsub.f32 %v1173_v40, %v1251_v39  ;;  %v3371_v62 = vsub.f32 %v1174_v3, %v1251_v39  ;;  %v1252_v16 = vmul.f32 0.00390625, %v1212_v63  ;;  %1333 = vadd.xlane.f32.xlu1 %v1332_v5 }
 0x3e5   : > { %v3375_v29 = vsub.f32 %v1175_v22, %v1252_v16  ;;  %v3379_v42 = vsub.f32 %v1176_v59, %v1252_v16  ;;  %v1301_v21 = vmul.f32 %v3367_v1, %v3367_v1  ;;  %v1302_v24 = vmul.f32 %v3371_v62, %v3371_v62 }
 0x3e7   : > { %v1335_v40 = vadd.f32 %v1302_v24, %v1301_v21  ;;  %v1303_v2 = vmul.f32 %v3375_v29, %v3375_v29  ;;  %v1304_v3 = vmul.f32 %v3379_v42, %v3379_v42 }
 0x3e8   : > { %v1215_v50 = vpop.xlane.xlu0 %1214 }
 0x3e9   : > { %v1253_v22 = vmul.f32 0.00390625, %v1215_v50  ;;  %1336 = vadd.xlane.f32.xlu0 %v1335_v40  ;;  %v1338_v33 = vadd.f32 %v1304_v3, %v1303_v2 }
 0x3ea   : > { %v1218_v7 = vpop.xlane.xlu1 %1217 }
 0x3eb   : > { %v3391_v59 = vsub.f32 %v1177_v60, %v1253_v22  ;;  %v3395_v27 = vsub.f32 %v1178_v36, %v1253_v22  ;;  %v1254_v20 = vmul.f32 0.00390625, %v1218_v7  ;;  %1339 = vadd.xlane.f32.xlu1 %v1338_v33  ;;  %v2193_v33 = vld [vmem:[%s3757_s3 + $0x68] sm:$0xff]   ;;  %v3814_v7 = vmax.f32 %v3223_v61, 0.0 }
 0x3ec   : > { %2005 = vmatprep.subr.bf16.mxu0 %v2193_v33 }
 0x3ed   : > { %v3399_v23 = vsub.f32 %v1179_v56, %v1254_v20  ;;  %v3403_v39 = vsub.f32 %v1180_v35, %v1254_v20  ;;  %v1305_v5 = vmul.f32 %v3391_v59, %v3391_v59  ;;  %v1306_v32 = vmul.f32 %v3395_v27, %v3395_v27 }
 0x3ef   : > { %v1341_v60 = vadd.f32 %v1306_v32, %v1305_v5  ;;  %v1307_v45 = vmul.f32 %v3399_v23, %v3399_v23  ;;  %v1308_v36 = vmul.f32 %v3403_v39, %v3403_v39  ;;  %v3815_v5 = vmax.f32 %v3227_v6, 0.0 }
 0x3f0   : > { %v1221_v8 = vpop.xlane.xlu0 %1220 }
 0x3f1   : > { %v1255_v56 = vmul.f32 0.00390625, %v1221_v8  ;;  %1342 = vadd.xlane.f32.xlu0 %v1341_v60  ;;  %v1344_v63 = vadd.f32 %v1308_v36, %v1307_v45  ;;  %v2195_v45 = vld [vmem:[%s3757_s3 + $0x70] sm:$0xff]  }
 0x3f2   : > { %v1224_v30 = vpop.xlane.xlu1 %1223 }
 0x3f3   : > { %v3415_v35 = vsub.f32 %v1181_v18, %v1255_v56  ;;  %v3419_v16 = vsub.f32 %v1182_v48, %v1255_v56  ;;  %v1256_v21 = vmul.f32 0.00390625, %v1224_v30  ;;  %1345 = vadd.xlane.f32.xlu1 %v1344_v63  ;;  %v2196_v56 = vld [vmem:[%s3757_s3 + $0x30] sm:$0xff]   ;;  %v3816_v30 = vmax.f32 %v3240_v37, 0.0 }
 0x3f5   : > { %v3423_v24 = vsub.f32 %v1183_v19, %v1256_v21  ;;  %v3427_v40 = vsub.f32 %v1184_v46, %v1256_v21  ;;  %v1309_v2 = vmul.f32 %v3415_v35, %v3415_v35  ;;  %v1310_v28 = vmul.f32 %v3419_v16, %v3419_v16 }
 0x3f7   : > { %v1347_v18 = vadd.f32 %v1310_v28, %v1309_v2  ;;  %v1311_v52 = vmul.f32 %v3423_v24, %v3423_v24  ;;  %v1312_v48 = vmul.f32 %v3427_v40, %v3427_v40  ;;  %v3817_v2 = vmax.f32 %v3243_v26, 0.0 }
 0x3f8   : > { %v1227_v57 = vpop.xlane.xlu0 %1226 }
 0x3f9   : > { %v1257_v19 = vmul.f32 0.00390625, %v1227_v57  ;;  %1348 = vadd.xlane.f32.xlu0 %v1347_v18  ;;  %v1350_v3 = vadd.f32 %v1312_v48, %v1311_v52  ;;  %v2197_v52 = vld [vmem:[%s3757_s3 + $0x78] sm:$0xff]   ;;  %v3818_v48 = vmax.f32 %v3247_v15, 0.0 }
 0x3fa   : > { %v1230_v47 = vpop.xlane.xlu1 %1229 }
 0x3fb   : > { %v3439_v46 = vsub.f32 %v1185_v25, %v1257_v19  ;;  %v3443_v50 = vsub.f32 %v1186_v9, %v1257_v19  ;;  %v1258_v22 = vmul.f32 0.00390625, %v1230_v47  ;;  %1351 = vadd.xlane.f32.xlu1 %v1350_v3  ;;  %v2194_v25 = vld [vmem:[%s3757_s3 + $0x28] sm:$0xff]   ;;  %v3819_v19 = vmax.f32 %v3251_v11, 0.0  ;;  %v2198_v47 = vld [vmem:[%s3757_s3 + $0x38] sm:$0xff]  }
 0x3fc   : > { %2006 = vmatpush3.bf16.msra.mxu0 %v2194_v25 }
 0x3fd   : > { %v3450_v20 = vsub.f32 %v3814_v7, %v1258_v22  ;;  %v3454_v32 = vsub.f32 %v3815_v5, %v1258_v22  ;;  %v1313_v55 = vmul.f32 %v3439_v46, %v3439_v46  ;;  %v1314_v43 = vmul.f32 %v3443_v50, %v3443_v50  ;;  %2007 = vmatprep.subr.bf16.mxu0 %v2195_v45 }
 0x3fe   : > { %v3822_v45 = vmax.f32 %v3275_v38, 0.0 }
 0x3ff   : > { %v1353_v9 = vadd.f32 %v1314_v43, %v1313_v55  ;;  %v1315_v61 = vmul.f32 %v3450_v20, %v3450_v20  ;;  %v1316_v6 = vmul.f32 %v3454_v32, %v3454_v32  ;;  %v3820_v43 = vmax.f32 %v3264_v54, 0.0 }
 0x400   : > { %v1233_v60 = vpop.xlane.xlu0 %1232  ;;  %2008 = vmatpush3.bf16.msra.mxu0 %v2196_v56 }
 0x401   : > { %v1259_v36 = vmul.f32 0.00390625, %v1233_v60  ;;  %1354 = vadd.xlane.f32.xlu0 %v1353_v9  ;;  %v1356_v8 = vadd.f32 %v1316_v6, %v1315_v61  ;;  %2009 = vmatprep.subr.bf16.mxu0 %v2197_v52  ;;  %v3821_v9 = vmax.f32 %v3267_v53, 0.0 }
 0x402   : > { %v1236_v63 = vpop.xlane.xlu1 %1235 }
 0x403   : > { %v3475_v21 = vsub.f32 %v3816_v30, %v1259_v36  ;;  %v3479_v28 = vsub.f32 %v3817_v2, %v1259_v36  ;;  %v1260_v18 = vmul.f32 0.00390625, %v1236_v63  ;;  %1357 = vadd.xlane.f32.xlu1 %v1356_v8 }
 0x404   : > { %2010 = vmatpush3.bf16.msra.mxu0 %v2198_v47 }
 0x405   : > { %v3486_v57 = vsub.f32 %v3818_v48, %v1260_v18  ;;  %v3490_v37 = vsub.f32 %v3819_v19, %v1260_v18  ;;  %v1317_v26 = vmul.f32 %v3475_v21, %v3475_v21  ;;  %v1318_v3 = vmul.f32 %v3479_v28, %v3479_v28 }
 0x406   : > { %v3823_v18 = vmax.f32 %v3291_v14, 0.0  ;;  %v3824_v19 = vmax.f32 %v3295_v0, 0.0 }
 0x407   : > { %v1359_v22 = vadd.f32 %v1318_v3, %v1317_v26  ;;  %v1319_v15 = vmul.f32 %v3486_v57, %v3486_v57  ;;  %v1320_v11 = vmul.f32 %v3490_v37, %v3490_v37  ;;  %v3825_v3 = vmax.f32 %v3299_v31, 0.0 }
 0x408   : > { %v1239_v33 = vpop.xlane.xlu0 %1238 }
 0x409   : > { %v1261_v7 = vmul.f32 0.00390625, %v1239_v33  ;;  %1360 = vadd.xlane.f32.xlu0 %v1359_v22  ;;  %v1362_v5 = vadd.f32 %v1320_v11, %v1319_v15 }
 0x40a   : > { %v1242_v55 = vpop.xlane.xlu1 %1241 }
 0x40b   : > { %v3505_v25 = vsub.f32 %v3820_v43, %v1261_v7  ;;  %v3509_v61 = vsub.f32 %v3821_v9, %v1261_v7  ;;  %v1262_v6 = vmul.f32 0.00390625, %v1242_v55  ;;  %1363 = vadd.xlane.f32.xlu1 %v1362_v5 }
 0x40d   : > { %v3513_v60 = vsub.f32 %v1195_v51, %v1262_v6  ;;  %v3517_v36 = vsub.f32 %v3822_v45, %v1262_v6  ;;  %v1321_v8 = vmul.f32 %v3505_v25, %v3505_v25  ;;  %v1322_v54 = vmul.f32 %v3509_v61, %v3509_v61 }
 0x40e   : > { %v1459_v6 = vsub.s32 4, %v2601_v12 }
 0x40f   : > { %v1365_v56 = vadd.f32 %v1322_v54, %v1321_v8  ;;  %v1323_v53 = vmul.f32 %v3513_v60, %v3513_v60  ;;  %v1324_v63 = vmul.f32 %v3517_v36, %v3517_v36 }
 0x410   : > { %v1245_v34 = vpop.xlane.xlu0 %1244 }
 0x411   : > { %v1263_v51 = vmul.f32 0.00390625, %v1245_v34  ;;  %1366 = vadd.xlane.f32.xlu0 %v1365_v56  ;;  %v1368_v30 = vadd.f32 %v1324_v63, %v1323_v53  ;;  %v1499_v53 = vsub.s32 5, %v2601_v12  ;;  %v3554_v63 = vrot.slane %v3109_v49, %v1459_v6 }
 0x412   : > { %v1248_v38 = vpop.xlane.xlu1 %1247  ;;  %v3557_v34 = vrot.slane %v3114_v4, %v1459_v6 }
 0x413   : > { %v3529_v2 = vsub.f32 %v1197_v58, %v1263_v51  ;;  %v3533_v52 = vsub.f32 %v3823_v18, %v1263_v51  ;;  %v1264_v48 = vmul.f32 0.00390625, %v1248_v38  ;;  %1369 = vadd.xlane.f32.xlu1 %v1368_v30 }
 0x415   : > { %v3537_v26 = vsub.f32 %v3824_v19, %v1264_v48  ;;  %v3541_v47 = vsub.f32 %v3825_v3, %v1264_v48  ;;  %v1325_v22 = vmul.f32 %v3529_v2, %v3529_v2  ;;  %v1326_v58 = vmul.f32 %v3533_v52, %v3533_v52 }
 0x416   : > { %v3562_v3 = vrot.slane %v3109_v49, %v1499_v53 }
 0x417   : > { %v1371_v41 = vadd.f32 %v1326_v58, %v1325_v22  ;;  %v1327_v14 = vmul.f32 %v3537_v26, %v3537_v26  ;;  %v1328_v15 = vmul.f32 %v3541_v47, %v3541_v47  ;;  %v3565_v22 = vrot.slane %v3114_v4, %v1499_v53 }
 0x419   : > { %1372 = vadd.xlane.f32.xlu0 %v1371_v41  ;;  %v1374_v0 = vadd.f32 %v1328_v15, %v1327_v14 }
 0x41b   : > { %1375 = vadd.xlane.f32.xlu1 %v1374_v0 }
 0x46e   : > { %v1331_v11 = vpop.xlane.xlu0 %1330 }
 0x46f   : > { %v1377_v31 = vmul.f32 0.00390625, %v1331_v11 }
 0x470   : > { %v1334_v33 = vpop.xlane.xlu1 %1333 }
 0x471   : > { %v1393_v7 = vadd.f32 1e-05, %v1377_v31  ;;  %v1378_v5 = vmul.f32 0.00390625, %v1334_v33 }
 0x473   : > { %2231 = vrsqrt.f32 %v1393_v7  ;;  %v1394_v55 = vadd.f32 1e-05, %v1378_v5 }
 0x475   : > { %2233 = vrsqrt.f32 %v1394_v55 }
 0x476   : > { %v1337_v43 = vpop.xlane.xlu0 %1336 }
 0x477   : > { %v1379_v9 = vmul.f32 0.00390625, %v1337_v43 }
 0x478   : > { %v1340_v45 = vpop.xlane.xlu1 %1339 }
 0x479   : > { %v1395_v8 = vadd.f32 1e-05, %v1379_v9  ;;  %v1380_v54 = vmul.f32 0.00390625, %v1340_v45 }
 0x47b   : > { %2235 = vrsqrt.f32 %v1395_v8  ;;  %v1396_v56 = vadd.f32 1e-05, %v1380_v54 }
 0x47d   : > { %v2232_v51 = vpop.eup %2231  ;;  %2237 = vrsqrt.f32 %v1396_v56 }
 0x47e   : > { %v1425_v30 = vmul.f32 %v2232_v51, %v3343_v17  ;;  %v1343_v38 = vpop.xlane.xlu0 %1342  ;;  %v1426_v18 = vmul.f32 %v2232_v51, %v3347_v13 }
 0x47f   : > { %v2234_v48 = vpop.eup %2233  ;;  %v1381_v19 = vmul.f32 0.00390625, %v1343_v38 }
 0x480   : > { %v1465_v58 = vmul.f32 %v3554_v63, %v1425_v30  ;;  %v1427_v41 = vmul.f32 %v2234_v48, %v3351_v44  ;;  %v1346_v14 = vpop.xlane.xlu1 %1345  ;;  %v1428_v15 = vmul.f32 %v2234_v48, %v3355_v10  ;;  %v1466_v17 = vmul.f32 %v3557_v34, %v1426_v18 }
 0x481   : > { %v1397_v0 = vadd.f32 1e-05, %v1381_v19  ;;  %v1382_v11 = vmul.f32 0.00390625, %v1346_v14 }
 0x482   : > { %v1467_v13 = vmul.f32 %v3554_v63, %v1427_v41  ;;  %v1468_v31 = vmul.f32 %v3557_v34, %v1428_v15  ;;  %v1506_v4 = vadd.f32 %v3565_v22, %v1466_v17  ;;  %v1505_v5 = vadd.f32 %v3562_v3, %v1465_v58 }
 0x483   : > { %2239 = vrsqrt.f32 %v1397_v0  ;;  %v1398_v33 = vadd.f32 1e-05, %v1382_v11 }
 0x484   : > { %v1508_v7 = vadd.f32 %v3565_v22, %v1468_v31  ;;  %v1507_v44 = vadd.f32 %v3562_v3, %v1467_v13 }
 0x485   : > { %v2236_v55 = vpop.eup %2235  ;;  %2241 = vrsqrt.f32 %v1398_v33 }
 0x486   : > { %v1349_v10 = vpop.xlane.xlu0 %1348  ;;  %v1538_v43 = vpack.c.bf16 %v1508_v7, %v1506_v4  ;;  %v1537_v9 = vpack.c.bf16 %v1507_v44, %v1505_v5  ;;  %v1430_v6 = vmul.f32 %v2236_v55, %v3371_v62  ;;  %v1429_v45 = vmul.f32 %v2236_v55, %v3367_v1 }
 0x487   : > { %v2238_v8 = vpop.eup %2237  ;;  %v1383_v54 = vmul.f32 0.00390625, %v1349_v10 }
 0x488   : > { %v1352_v56 = vpop.xlane.xlu1 %1351  ;;  %1717 = vmatprep.mubr.bf16.mxu0 %v1538_v43  ;;  %v1432_v53 = vmul.f32 %v2238_v8, %v3379_v42  ;;  %v1470_v51 = vmul.f32 %v3557_v34, %v1430_v6  ;;  %v1431_v30 = vmul.f32 %v2238_v8, %v3375_v29  ;;  %v1469_v38 = vmul.f32 %v3554_v63, %v1429_v45 }
 0x489   : > { %v1399_v18 = vadd.f32 1e-05, %v1383_v54  ;;  %v1384_v48 = vmul.f32 0.00390625, %v1352_v56  ;;  %1718 = vmatmul.mubr.bf16.vlgmr.msra.gmra.mrb[32].mxu0 %v1537_v9 }
 0x48a   : > { %v1472_v19 = vmul.f32 %v3557_v34, %v1432_v53  ;;  %v1471_v62 = vmul.f32 %v3554_v63, %v1431_v30  ;;  %v1510_v58 = vadd.f32 %v3565_v22, %v1470_v51  ;;  %v1509_v42 = vadd.f32 %v3562_v3, %v1469_v38 }
 0x48b   : > { %2243 = vrsqrt.f32 %v1399_v18  ;;  %v1400_v1 = vadd.f32 1e-05, %v1384_v48 }
 0x48c   : > { %v1512_v41 = vadd.f32 %v3565_v22, %v1472_v19  ;;  %v1511_v14 = vadd.f32 %v3562_v3, %v1471_v62 }
 0x48d   : > { %v2240_v29 = vpop.eup %2239  ;;  %2245 = vrsqrt.f32 %v1400_v1 }
 0x48e   : > { %v1355_v15 = vpop.xlane.xlu0 %1354  ;;  %v1540_v17 = vpack.c.bf16 %v1512_v41, %v1510_v58  ;;  %v1539_v0 = vpack.c.bf16 %v1511_v14, %v1509_v42  ;;  %v1434_v11 = vmul.f32 %v2240_v29, %v3395_v27  ;;  %v1433_v13 = vmul.f32 %v2240_v29, %v3391_v59 }
 0x48f   : > { %v2242_v31 = vpop.eup %2241  ;;  %v1385_v33 = vmul.f32 0.00390625, %v1355_v15 }
 0x490   : > { %v1358_v4 = vpop.xlane.xlu1 %1357  ;;  %1725 = vmatprep.mubr.bf16.mxu0 %v1540_v17  ;;  %v1436_v7 = vmul.f32 %v2242_v31, %v3403_v39  ;;  %v1474_v5 = vmul.f32 %v3557_v34, %v1434_v11  ;;  %v1435_v44 = vmul.f32 %v2242_v31, %v3399_v23  ;;  %v1473_v55 = vmul.f32 %v3554_v63, %v1433_v13 }
 0x491   : > { %v1401_v10 = vadd.f32 1e-05, %v1385_v33  ;;  %v1386_v43 = vmul.f32 0.00390625, %v1358_v4  ;;  %1726 = vmatmul.mubr.bf16.gmra.mrb[36].mxu0 %v1539_v0 }
 0x492   : > { %v1476_v9 = vmul.f32 %v3557_v34, %v1436_v7  ;;  %v1475_v27 = vmul.f32 %v3554_v63, %v1435_v44  ;;  %v1514_v6 = vadd.f32 %v3565_v22, %v1474_v5  ;;  %v1513_v39 = vadd.f32 %v3562_v3, %v1473_v55 }
 0x493   : > { %2247 = vrsqrt.f32 %v1401_v10  ;;  %v1402_v59 = vadd.f32 1e-05, %v1386_v43 }
 0x494   : > { %v1516_v45 = vadd.f32 %v3565_v22, %v1476_v9  ;;  %v1515_v8 = vadd.f32 %v3562_v3, %v1475_v27 }
 0x495   : > { %v2244_v23 = vpop.eup %2243  ;;  %2249 = vrsqrt.f32 %v1402_v59 }
 0x496   : > { %v1361_v54 = vpop.xlane.xlu0 %1360  ;;  %v1542_v56 = vpack.c.bf16 %v1516_v45, %v1514_v6  ;;  %v1541_v53 = vpack.c.bf16 %v1515_v8, %v1513_v39  ;;  %v1438_v51 = vmul.f32 %v2244_v23, %v3419_v16  ;;  %v1437_v30 = vmul.f32 %v2244_v23, %v3415_v35 }
 0x497   : > { %v2246_v38 = vpop.eup %2245  ;;  %v1387_v18 = vmul.f32 0.00390625, %v1361_v54 }
 0x498   : > { %v1364_v48 = vpop.xlane.xlu1 %1363  ;;  %1733 = vmatprep.mubr.bf16.mxu0 %v1542_v56  ;;  %v1440_v19 = vmul.f32 %v2246_v38, %v3427_v40  ;;  %v1478_v62 = vmul.f32 %v3557_v34, %v1438_v51  ;;  %v1439_v1 = vmul.f32 %v2246_v38, %v3423_v24  ;;  %v1477_v58 = vmul.f32 %v3554_v63, %v1437_v30 }
 0x499   : > { %v1403_v41 = vadd.f32 1e-05, %v1387_v18  ;;  %v1388_v42 = vmul.f32 0.00390625, %v1364_v48  ;;  %1734 = vmatmul.mubr.bf16.gmra.mrb[40].mxu0 %v1541_v53 }
 0x49a   : > { %v1480_v14 = vmul.f32 %v3557_v34, %v1440_v19  ;;  %v1479_v16 = vmul.f32 %v3554_v63, %v1439_v1  ;;  %v1518_v29 = vadd.f32 %v3565_v22, %v1478_v62  ;;  %v1517_v40 = vadd.f32 %v3562_v3, %v1477_v58 }
 0x49b   : > { %2251 = vrsqrt.f32 %v1403_v41  ;;  %v1404_v35 = vadd.f32 1e-05, %v1388_v42 }
 0x49c   : > { %v1520_v15 = vadd.f32 %v3565_v22, %v1480_v14  ;;  %v1519_v17 = vadd.f32 %v3562_v3, %v1479_v16 }
 0x49d   : > { %v2248_v24 = vpop.eup %2247  ;;  %2253 = vrsqrt.f32 %v1404_v35 }
 0x49e   : > { %v1367_v0 = vpop.xlane.xlu0 %1366  ;;  %v1544_v11 = vpack.c.bf16 %v1520_v15, %v1518_v29  ;;  %v1543_v13 = vpack.c.bf16 %v1519_v17, %v1517_v40  ;;  %v1442_v31 = vmul.f32 %v2248_v24, %v3443_v50  ;;  %v1441_v33 = vmul.f32 %v2248_v24, %v3439_v46 }
 0x49f   : > { %v2250_v4 = vpop.eup %2249  ;;  %v1389_v7 = vmul.f32 0.00390625, %v1367_v0 }
 0x4a0   : > { %v1370_v5 = vpop.xlane.xlu1 %1369  ;;  %1741 = vmatprep.mubr.bf16.mxu0 %v1544_v11  ;;  %v1444_v44 = vmul.f32 %v2250_v4, %v3454_v32  ;;  %v1482_v55 = vmul.f32 %v3557_v34, %v1442_v31  ;;  %v1443_v10 = vmul.f32 %v2250_v4, %v3450_v20  ;;  %v1481_v43 = vmul.f32 %v3554_v63, %v1441_v33 }
 0x4a1   : > { %v1405_v9 = vadd.f32 1e-05, %v1389_v7  ;;  %v1390_v27 = vmul.f32 0.00390625, %v1370_v5  ;;  %1742 = vmatmul.mubr.bf16.gmra.mrb[44].mxu0 %v1543_v13 }
 0x4a2   : > { %v1484_v59 = vmul.f32 %v3557_v34, %v1444_v44  ;;  %v1483_v50 = vmul.f32 %v3554_v63, %v1443_v10  ;;  %v1522_v6 = vadd.f32 %v3565_v22, %v1482_v55  ;;  %v1521_v32 = vadd.f32 %v3562_v3, %v1481_v43 }
 0x4a3   : > { %2255 = vrsqrt.f32 %v1405_v9  ;;  %v1406_v46 = vadd.f32 1e-05, %v1390_v27 }
 0x4a4   : > { %v1524_v45 = vadd.f32 %v3565_v22, %v1484_v59  ;;  %v1523_v39 = vadd.f32 %v3562_v3, %v1483_v50 }
 0x4a5   : > { %v2252_v20 = vpop.eup %2251  ;;  %2257 = vrsqrt.f32 %v1406_v46 }
 0x4a6   : > { %v1373_v8 = vpop.xlane.xlu0 %1372  ;;  %v1546_v23 = vpack.c.bf16 %v1524_v45, %v1522_v6  ;;  %v1545_v54 = vpack.c.bf16 %v1523_v39, %v1521_v32  ;;  %v1446_v56 = vmul.f32 %v2252_v20, %v3479_v28  ;;  %v1445_v53 = vmul.f32 %v2252_v20, %v3475_v21 }
 0x4a7   : > { %v2254_v51 = vpop.eup %2253  ;;  %v1391_v30 = vmul.f32 0.00390625, %v1373_v8 }
 0x4a8   : > { %v1376_v38 = vpop.xlane.xlu1 %1375  ;;  %1749 = vmatprep.mubr.bf16.mxu0 %v1546_v23  ;;  %v1448_v18 = vmul.f32 %v2254_v51, %v3490_v37  ;;  %v1486_v48 = vmul.f32 %v3557_v34, %v1446_v56  ;;  %v1447_v19 = vmul.f32 %v2254_v51, %v3486_v57  ;;  %v1485_v62 = vmul.f32 %v3554_v63, %v1445_v53 }
 0x4a9   : > { %v1407_v1 = vadd.f32 1e-05, %v1391_v30  ;;  %v1392_v58 = vmul.f32 0.00390625, %v1376_v38  ;;  %1750 = vmatmul.mubr.bf16.gmra.mrb[48].mxu0 %v1545_v54 }
 0x4aa   : > { %v1488_v41 = vmul.f32 %v3557_v34, %v1448_v18  ;;  %v1487_v28 = vmul.f32 %v3554_v63, %v1447_v19  ;;  %v1526_v42 = vadd.f32 %v3565_v22, %v1486_v48  ;;  %v1525_v37 = vadd.f32 %v3562_v3, %v1485_v62 }
 0x4ab   : > { %2259 = vrsqrt.f32 %v1407_v1  ;;  %v1408_v21 = vadd.f32 1e-05, %v1392_v58 }
 0x4ac   : > { %v1528_v14 = vadd.f32 %v3565_v22, %v1488_v41  ;;  %v1527_v16 = vadd.f32 %v3562_v3, %v1487_v28 }
 0x4ad   : > { %v2256_v57 = vpop.eup %2255  ;;  %2261 = vrsqrt.f32 %v1408_v21 }
 0x4ae   : > { %v1548_v35 = vpack.c.bf16 %v1528_v14, %v1526_v42  ;;  %v1547_v29 = vpack.c.bf16 %v1527_v16, %v1525_v37  ;;  %v1450_v15 = vmul.f32 %v2256_v57, %v3509_v61  ;;  %v1449_v40 = vmul.f32 %v2256_v57, %v3505_v25 }
 0x4af   : > { %v2258_v17 = vpop.eup %2257 }
 0x4b0   : > { %1757 = vmatprep.mubr.bf16.mxu0 %v1548_v35  ;;  %v1452_v24 = vmul.f32 %v2258_v17, %v3517_v36  ;;  %v1490_v0 = vmul.f32 %v3557_v34, %v1450_v15  ;;  %v1451_v11 = vmul.f32 %v2258_v17, %v3513_v60  ;;  %v1489_v13 = vmul.f32 %v3554_v63, %v1449_v40 }
 0x4b1   : > { %1758 = vmatmul.mubr.bf16.gmra.mrb[52].mxu0 %v1547_v29 }
 0x4b2   : > { %v1492_v31 = vmul.f32 %v3557_v34, %v1452_v24  ;;  %v1491_v33 = vmul.f32 %v3554_v63, %v1451_v11  ;;  %v1530_v4 = vadd.f32 %v3565_v22, %v1490_v0  ;;  %v1529_v25 = vadd.f32 %v3562_v3, %v1489_v13 }
 0x4b4   : > { %v1532_v61 = vadd.f32 %v3565_v22, %v1492_v31  ;;  %v1531_v7 = vadd.f32 %v3562_v3, %v1491_v33 }
 0x4b5   : > { %v2260_v36 = vpop.eup %2259 }
 0x4b6   : > { %v1550_v5 = vpack.c.bf16 %v1532_v61, %v1530_v4  ;;  %v1549_v44 = vpack.c.bf16 %v1531_v7, %v1529_v25  ;;  %v1454_v60 = vmul.f32 %v2260_v36, %v3533_v52  ;;  %v1453_v55 = vmul.f32 %v2260_v36, %v3529_v2 }
 0x4b7   : > { %v2262_v10 = vpop.eup %2261 }
 0x4b8   : > { %1765 = vmatprep.mubr.bf16.mxu0 %v1550_v5  ;;  %v1456_v43 = vmul.f32 %v2262_v10, %v3541_v47  ;;  %v1494_v9 = vmul.f32 %v3557_v34, %v1454_v60  ;;  %v1455_v27 = vmul.f32 %v2262_v10, %v3537_v26  ;;  %v1493_v59 = vmul.f32 %v3554_v63, %v1453_v55 }
 0x4b9   : > { %1766 = vmatmul.mubr.bf16.gmra.mrb[56].mxu0 %v1549_v44  ;;  %v1587_v26 = vsub.s32 6, %v2601_v12 }
 0x4ba   : > { %v1496_v50 = vmul.f32 %v3557_v34, %v1456_v43  ;;  %v1495_v46 = vmul.f32 %v3554_v63, %v1455_v27  ;;  %v1534_v6 = vadd.f32 %v3565_v22, %v1494_v9  ;;  %v1533_v2 = vadd.f32 %v3562_v3, %v1493_v59 }
 0x4bb   : > { %v3663_v34 = vrot.slane %v3109_v49, %v1587_v26 }
 0x4bc   : > { %v1536_v52 = vadd.f32 %v3565_v22, %v1496_v50  ;;  %v1535_v45 = vadd.f32 %v3562_v3, %v1495_v46 }
 0x4be   : > { %v1552_v47 = vpack.c.bf16 %v1536_v52, %v1534_v6  ;;  %v1551_v32 = vpack.c.bf16 %v1535_v45, %v1533_v2 }
 0x4c0   : > { %1773 = vmatprep.mubr.bf16.mxu0 %v1552_v47 }
 0x4c1   : > { %1774 = vmatmul.mubr.bf16.gmra.mrb[60].mxu0 %v1551_v32 }
 0x55c   : > { %v2011_v39 = vpop.f32.mrb[32].mxu0 }
 0x55d   : > { %v2012_v63 = vpop.f32.mrb[33].mxu0 }
 0x55e   : > { %v2013_v20 = vadd.f32 %v2012_v63, %v2011_v39  ;;  %v2014_v8 = vpop.f32.mrb[34].mxu0 }
 0x55f   : > { %v2015_v22 = vpop.f32.mrb[35].mxu0 }
 0x560   : > { %v1720_v23 = vadd.f32 %v2013_v20, %v3663_v34  ;;  %v2016_v54 = vadd.f32 %v2015_v22, %v2014_v8 }
 0x562   : > { %2263 = vtanh.f32 %v1720_v23  ;;  %v1723_v3 = vadd.f32 %v2016_v54, %v3663_v34 }
 0x564   : > { %2265 = vtanh.f32 %v1723_v3  ;;  %v2017_v56 = vpop.f32.mrb[36].mxu0 }
 0x565   : > { %v2018_v53 = vpop.f32.mrb[37].mxu0 }
 0x566   : > { %v2019_v12 = vadd.f32 %v2018_v53, %v2017_v56  ;;  %v2020_v51 = vpop.f32.mrb[38].mxu0 }
 0x567   : > { %v2021_v49 = vpop.f32.mrb[39].mxu0 }
 0x568   : > { %v1728_v30 = vadd.f32 %v2019_v12, %v3663_v34  ;;  %v2022_v38 = vadd.f32 %v2021_v49, %v2020_v51 }
 0x56a   : > { %2267 = vtanh.f32 %v1728_v30  ;;  %v1731_v18 = vadd.f32 %v2022_v38, %v3663_v34 }
 0x56c   : > { %v2264_v48 = vpop.eup %2263  ;;  %2269 = vtanh.f32 %v1731_v18  ;;  %v2023_v19 = vpop.f32.mrb[40].mxu0 }
 0x56d   : > { %1798 = vst [vmem:[%s3672_s16] sm:$0xff] %v2264_v48  ;;  %v2024_v62 = vpop.f32.mrb[41].mxu0 }
 0x56e   : > { %v2266_v1 = vpop.eup %2265  ;;  %v2025_v58 = vadd.f32 %v2024_v62, %v2023_v19  ;;  %v2026_v41 = vpop.f32.mrb[42].mxu0 }
 0x56f   : > { %1799 = vst [vmem:[%s3672_s16 + $0x8] sm:$0xff] %v2266_v1  ;;  %v2027_v28 = vpop.f32.mrb[43].mxu0 }
 0x570   : > { %v1736_v21 = vadd.f32 %v2025_v58, %v3663_v34  ;;  %v2028_v42 = vadd.f32 %v2027_v28, %v2026_v41 }
 0x572   : > { %2271 = vtanh.f32 %v1736_v21  ;;  %v1739_v14 = vadd.f32 %v2028_v42, %v3663_v34 }
 0x574   : > { %v2268_v37 = vpop.eup %2267  ;;  %2273 = vtanh.f32 %v1739_v14  ;;  %v2029_v16 = vpop.f32.mrb[44].mxu0 }
 0x575   : > { %1800 = vst [vmem:[%s3672_s16 + $0x10] sm:$0xff] %v2268_v37  ;;  %v2030_v57 = vpop.f32.mrb[45].mxu0 }
 0x576   : > { %v2270_v35 = vpop.eup %2269  ;;  %v2031_v29 = vadd.f32 %v2030_v57, %v2029_v16  ;;  %v2032_v15 = vpop.f32.mrb[46].mxu0 }
 0x577   : > { %1801 = vst [vmem:[%s3672_s16 + $0x18] sm:$0xff] %v2270_v35  ;;  %v2033_v40 = vpop.f32.mrb[47].mxu0 }
 0x578   : > { %v1744_v17 = vadd.f32 %v2031_v29, %v3663_v34  ;;  %v2034_v24 = vadd.f32 %v2033_v40, %v2032_v15 }
 0x57a   : > { %2275 = vtanh.f32 %v1744_v17  ;;  %v1747_v0 = vadd.f32 %v2034_v24, %v3663_v34 }
 0x57c   : > { %v2272_v11 = vpop.eup %2271  ;;  %2277 = vtanh.f32 %v1747_v0  ;;  %v2035_v13 = vpop.f32.mrb[48].mxu0 }
 0x57d   : > { %1802 = vst [vmem:[%s3672_s16 + $0x20] sm:$0xff] %v2272_v11  ;;  %v2036_v31 = vpop.f32.mrb[49].mxu0 }
 0x57e   : > { %v2274_v33 = vpop.eup %2273  ;;  %v2037_v4 = vadd.f32 %v2036_v31, %v2035_v13  ;;  %v2038_v61 = vpop.f32.mrb[50].mxu0 }
 0x57f   : > { %1803 = vst [vmem:[%s3672_s16 + $0x28] sm:$0xff] %v2274_v33  ;;  %v2039_v25 = vpop.f32.mrb[51].mxu0 }
 0x580   : > { %v1752_v7 = vadd.f32 %v2037_v4, %v3663_v34  ;;  %v2040_v36 = vadd.f32 %v2039_v25, %v2038_v61 }
 0x582   : > { %2279 = vtanh.f32 %v1752_v7  ;;  %v1755_v5 = vadd.f32 %v2040_v36, %v3663_v34 }
 0x584   : > { %v2276_v44 = vpop.eup %2275  ;;  %2281 = vtanh.f32 %v1755_v5  ;;  %v2041_v60 = vpop.f32.mrb[52].mxu0 }
 0x585   : > { %1804 = vst [vmem:[%s3672_s16 + $0x30] sm:$0xff] %v2276_v44  ;;  %v2042_v55 = vpop.f32.mrb[53].mxu0 }
 0x586   : > { %v2278_v10 = vpop.eup %2277  ;;  %v2043_v43 = vadd.f32 %v2042_v55, %v2041_v60  ;;  %v2044_v9 = vpop.f32.mrb[54].mxu0 }
 0x587   : > { %1805 = vst [vmem:[%s3672_s16 + $0x38] sm:$0xff] %v2278_v10  ;;  %v2045_v27 = vpop.f32.mrb[55].mxu0 }
 0x588   : > { %v1760_v59 = vadd.f32 %v2043_v43, %v3663_v34  ;;  %v2046_v50 = vadd.f32 %v2045_v27, %v2044_v9 }
 0x58a   : > { %2283 = vtanh.f32 %v1760_v59  ;;  %v1763_v46 = vadd.f32 %v2046_v50, %v3663_v34 }
 0x58c   : > { %v2280_v6 = vpop.eup %2279  ;;  %2285 = vtanh.f32 %v1763_v46  ;;  %v2047_v52 = vpop.f32.mrb[56].mxu0 }
 0x58d   : > { %1806 = vst [vmem:[%s3672_s16 + $0x40] sm:$0xff] %v2280_v6  ;;  %v2048_v2 = vpop.f32.mrb[57].mxu0 }
 0x58e   : > { %v2282_v45 = vpop.eup %2281  ;;  %v2049_v47 = vadd.f32 %v2048_v2, %v2047_v52  ;;  %v2050_v32 = vpop.f32.mrb[58].mxu0 }
 0x58f   : > { %1807 = vst [vmem:[%s3672_s16 + $0x48] sm:$0xff] %v2282_v45  ;;  %v2051_v26 = vpop.f32.mrb[59].mxu0 }
 0x590   : > { %v1768_v39 = vadd.f32 %v2049_v47, %v3663_v34  ;;  %v2052_v63 = vadd.f32 %v2051_v26, %v2050_v32 }
 0x592   : > { %2287 = vtanh.f32 %v1768_v39  ;;  %v1771_v20 = vadd.f32 %v2052_v63, %v3663_v34 }
 0x594   : > { %v2284_v8 = vpop.eup %2283  ;;  %2289 = vtanh.f32 %v1771_v20  ;;  %v2053_v22 = vpop.f32.mrb[60].mxu0 }
 0x595   : > { %1808 = vst [vmem:[%s3672_s16 + $0x50] sm:$0xff] %v2284_v8  ;;  %v2054_v23 = vpop.f32.mrb[61].mxu0 }
 0x596   : > { %v2286_v54 = vpop.eup %2285  ;;  %v2055_v3 = vadd.f32 %v2054_v23, %v2053_v22  ;;  %v2056_v56 = vpop.f32.mrb[62].mxu0 }
 0x597   : > { %1809 = vst [vmem:[%s3672_s16 + $0x58] sm:$0xff] %v2286_v54  ;;  %v2057_v53 = vpop.f32.mrb[63].mxu0 }
 0x598   : > { %v1776_v12 = vadd.f32 %v2055_v3, %v3663_v34  ;;  %v2058_v51 = vadd.f32 %v2057_v53, %v2056_v56 }
 0x59a   : > { %2291 = vtanh.f32 %v1776_v12  ;;  %v1779_v49 = vadd.f32 %v2058_v51, %v3663_v34 }
 0x59c   : > { %v2288_v30 = vpop.eup %2287  ;;  %2293 = vtanh.f32 %v1779_v49 }
 0x59d   : > { %1810 = vst [vmem:[%s3672_s16 + $0x60] sm:$0xff] %v2288_v30 }
 0x59e   : > { %v2290_v38 = vpop.eup %2289 }
 0x59f   : > { %1811 = vst [vmem:[%s3672_s16 + $0x68] sm:$0xff] %v2290_v38 }
 0x5a4   : > { %v2292_v18 = vpop.eup %2291 }
 0x5a5   : > { %1812 = vst [vmem:[%s3672_s16 + $0x70] sm:$0xff] %v2292_v18 }
 0x5a6   : > { %v2294_v34 = vpop.eup %2293 }
 0x5a7   : > { %1813 = vst [vmem:[%s3672_s16 + $0x78] sm:$0xff] %v2294_v34 }
 0x5a8   : > { %2366 = shalt.err (!%p2363_p11)
}
 0x5a9   : > { %s2367_s9 = scalar_lea.hbm %s3705_s8, 2048  ;;  %s2371_s13 = scalar_lea.hbm %s3759_s5, 4096 }
 0x5aa   : > { %p2368_p13 = scmp.ne.s32.totalorder %s3705_s8, %s2367_s9  ;;  %p2372_p6 = scmp.lt.u32.totalorder %s3705_s8, %s3759_s5 }
 0x5ab   : > { %p2373_p9 = scmp.lt.u32.totalorder %s2371_s13, %s2367_s9  ;;  %p2375_p10 = scmp.lt.u32.totalorder %s2367_s9, %s3705_s8 }
 0x5ac   : > { %p2369_p5 = pnand %p2368_p13, %p3826_p1 }
 0x5ad   : > { %p2374_p12 = por %p2373_p9, %p2372_p6 }
 0x5ae   : > { %p2370_p0 = pneg %p2369_p5 }
 0x5af   : > { %p2376_p2 = por %p2375_p10, %p2374_p12 }
 0x5b1   : > { %p2377_p3 = pnand %p2376_p2, %p2370_p0 }
 0x5b3   : > { %2380 = shalt.err (!%p2377_p3)
}
 0x5b4   : > { %s2431_s16 = smov 128   ;;  %s2432_s17 = smov 8  }
 0x5b5   : > { %2067 = dma.vmem_to_hbm [thread:$0]  (%p3826_p1), %s3707_s7, 2048, %s3705_s8, %s3713_s30, %s2431_s16, %s2431_s16, %s2432_s17  }
 0x5b6 PF: > { %p2084_p4 = scmp.ge.s32.totalorder %s2423_s21, 2  ;;  %s1843_s23 = sand.u32 1, %s2411_s18  }
 0x5b7   : > { %p3827_p7 = scmp.ne.s32.totalorder %s3791_s29, 0  ;;  %s1844_s25 = scalar_lea.sflag [#allocation4], %s1843_s23 }
 0x5b9   : > { %p2077_p8 = pnand %p2084_p4, %p3827_p7 }
 0x5bb   : > { %2406 = dma.done.wait (!%p2077_p8), %s1844_s25, 2048  }
 0x5bc   : > { %2408 = vsyncadd (!%p2077_p8), %s1844_s25, 4294965248  ;;  %p17_p11 = scmp.ge.s32.totalorder %s2488_s24, 4   ;;  %s3828_s18 = smov %s2415_s19 }
 0x5bd   : > { %s3829_s19 = smov %s2419_s20  ;;  %s3830_s20 = smov %s2499_s27 }
 0x5be   : > { %s3831_s21 = smov %s2488_s24  ;;  %19 = sbr.rel (!%p17_p11) target bundleno = 5 (0x5), region = 84 }
 0x5c5   :  { %1849 = vsyncpa [#allocation3], 1 }
 0x5c6   :  { %1851 = vsyncpa [#allocation3 + $0x1], 1 }
 0x5c7   :  { %1852 = vsyncpa [#allocation6], 1 }
 0x5c8   :  { %1853 = vsyncpa [#allocation4], 1 }
 0x5c9   :  { %1855 = vsyncpa [#allocation4 + $0x1], 1 }

</bundles_post_ra>
